<compile_context>
chip_gen: v5e
topology: v5e:2x2
jax: 0.10.0
libtpu: 0.0.40
codegen_flags: <defaults>
</compile_context>

<pallas_src>
import math

import jax
import jax.numpy as jnp
from jax import lax
from jax.experimental import pallas as pl
from jax.experimental.pallas import tpu as pltpu

# hparams (small, consistent with the module)
B = 2         # batch
S = 8         # sequence length
H = 32        # hidden_size
NH = 4        # n_heads
HD = H // NH  # head dim
FF = 64       # hidden_ff
EPS = 1e-6    # ScaleNorm eps
GATE_BIAS = -2.0

# gate weight buffer lanes: [Wr|Wz|Wg|pad32 || Ur|Uz|Ug|pad32]  -> (H, 256)
GATE_PAD = 128 - 3 * H
# bias buffer rows (each lane-0 aligned): 0=[bq'|bk|bv], 1=bo, 2=bz1, 3=b1, 4=b2, 5=bz2
N_BIAS_ROWS = 6


def _scale_norm(x, g):
    # x * g / clamp(||x||, eps)  ==  x * g * rsqrt(max(sum(x^2), eps^2))
    ss = jnp.sum(x * x, axis=-1, keepdims=True)
    inv = lax.rsqrt(jnp.maximum(ss, EPS * EPS))
    return x * (g * inv)


def _gelu_exact(x):
    return x * 0.5 * (1.0 + lax.erf(x / math.sqrt(2.0)))


def _gate(x, y, w_gate, bz):
    # w_gate: (H, 256) bf16 = [Wr | Wz | Wg | pad || Ur | Uz | Ug | pad]
    y16 = y.astype(jnp.bfloat16)
    x16 = x.astype(jnp.bfloat16)
    wy = jnp.dot(y16, w_gate[:, 0:3 * H],
                 preferred_element_type=jnp.float32)          # [Wr y | Wz y | Wg y]
    ux = jnp.dot(x16, w_gate[:, 128:128 + 2 * H],
                 preferred_element_type=jnp.float32)          # [Ur x | Uz x]
    r = jax.nn.sigmoid(wy[:, 0:H] + ux[:, 0:H])
    z = jax.nn.sigmoid(wy[:, H:2 * H] + bz + ux[:, H:2 * H])
    h = jnp.tanh(wy[:, 2 * H:3 * H]
                 + jnp.dot((r * x).astype(jnp.bfloat16),
                           w_gate[:, 128 + 2 * H:128 + 3 * H],
                           preferred_element_type=jnp.float32))
    return (1.0 - z) * x + z * h


def encoder_layer_kernel(x_ref, gains_ref, bias_ref, w_qkv_ref, w_o_ref,
                         w_gate1_ref, w_ff1_ref, w_ff2_ref, w_gate2_ref,
                         o_ref):
    bb, s, h = x_ref.shape
    n = bb * s
    # merge (bb, s) -> rows; s == 8 keeps the native (8,128) tiling intact.
    x = x_ref[...].reshape(n, h).astype(jnp.float32)
    bias = bias_ref[...]                  # (6, 128) f32, each segment lane-0 aligned

    # ---------------- attention sublayer: ScaleNorm -> MHA -> Gate ----------------
    xn = _scale_norm(x, gains_ref[0])
    # softmax 1/sqrt(HD) scale is folded into Wq / bq at pack time.
    qkv = (jnp.dot(xn.astype(jnp.bfloat16), w_qkv_ref[...],
                   preferred_element_type=jnp.float32) + bias[0:1, 0:3 * H])
    q = qkv[:, 0:H].reshape(bb, s, H)
    k = qkv[:, H:2 * H].reshape(bb, s, H)
    v = qkv[:, 2 * H:3 * H].reshape(bb, s, H)

    # per-head attention, O-projection accumulated per head (no lane concat)
    y = jnp.zeros((n, H), jnp.float32) + bias[1:2, 0:H]        # start from bo
    for hh in range(NH):                                       # static unrolled
        sl = slice(hh * HD, (hh + 1) * HD)
        qh = q[:, :, sl].astype(jnp.bfloat16)
        kh = k[:, :, sl].astype(jnp.bfloat16)
        vh = v[:, :, sl].astype(jnp.bfloat16)
        sc = jnp.einsum("bqd,bkd->bqk", qh, kh,
                        preferred_element_type=jnp.float32)
        sc = sc - jnp.max(sc, axis=-1, keepdims=True)
        p = jnp.exp(sc)
        # approximate EUP reciprocal (intentional precision trade; 2e-3 tol).
        p = p * pl.reciprocal(jnp.sum(p, axis=-1, keepdims=True), approx=True)
        pv = jnp.einsum("bqk,bkd->bqd", p.astype(jnp.bfloat16), vh,
                        preferred_element_type=jnp.float32)
        y = y + jnp.dot(pv.reshape(n, HD).astype(jnp.bfloat16), w_o_ref[hh],
                        preferred_element_type=jnp.float32)
    x = _gate(x, y, w_gate1_ref[...], bias[2:3, 0:H])

    # ------------- position-wise sublayer: ScaleNorm -> FFN(GELU) -> Gate -------------
    xn = _scale_norm(x, gains_ref[1])
    hff = _gelu_exact(
        jnp.dot(xn.astype(jnp.bfloat16), w_ff1_ref[...],
                preferred_element_type=jnp.float32) + bias[3:4, 0:FF])
    y = (jnp.dot(hff.astype(jnp.bfloat16), w_ff2_ref[...],
                 preferred_element_type=jnp.float32) + bias[4:5, 0:H])
    x = _gate(x, y, w_gate2_ref[...], bias[5:6, 0:H])

    o_ref[...] = x.reshape(bb, s, h).astype(o_ref.dtype)


# ----------------------------- parameter handling -----------------------------
def init_params(key):
    def lin(k, fan_in, fan_out):
        return jax.random.normal(k, (fan_in, fan_out), jnp.float32) * 0.05

    keys = jax.random.split(key, 24)
    p = {}
    p["g1"] = jnp.full((1, 1), math.sqrt(H), jnp.float32)
    p["g2"] = jnp.full((1, 1), math.sqrt(H), jnp.float32)
    p["wq"], p["bq"] = lin(keys[0], H, H), jnp.zeros((1, H), jnp.float32)
    p["wk"], p["bk"] = lin(keys[1], H, H), jnp.zeros((1, H), jnp.float32)
    p["wv"], p["bv"] = lin(keys[2], H, H), jnp.zeros((1, H), jnp.float32)
    p["wo"], p["bo"] = lin(keys[3], H, H), jnp.zeros((1, H), jnp.float32)
    p["wr1"], p["ur1"] = lin(keys[4], H, H), lin(keys[5], H, H)
    p["wz1"], p["uz1"] = lin(keys[6], H, H), lin(keys[7], H, H)
    p["bz1"] = jnp.full((1, H), GATE_BIAS, jnp.float32)
    p["wg1"], p["ug1"] = lin(keys[8], H, H), lin(keys[9], H, H)
    p["w1"], p["b1"] = lin(keys[10], H, FF), jnp.zeros((1, FF), jnp.float32)
    p["w2"], p["b2"] = lin(keys[11], FF, H), jnp.zeros((1, H), jnp.float32)
    p["wr2"], p["ur2"] = lin(keys[12], H, H), lin(keys[13], H, H)
    p["wz2"], p["uz2"] = lin(keys[14], H, H), lin(keys[15], H, H)
    p["bz2"] = jnp.full((1, H), GATE_BIAS, jnp.float32)
    p["wg2"], p["ug2"] = lin(keys[16], H, H), lin(keys[17], H, H)
    return p


def pack_params(p):
    """Pack 28 small arrays into 8 lane-aligned buffers (weights in bf16)."""
    bf16 = jnp.bfloat16
    scale = 1.0 / math.sqrt(HD)   # folded softmax scale
    gains = jnp.concatenate(
        [p["g1"].reshape(1), p["g2"].reshape(1)]).astype(jnp.float32)       # (2,)
    w_qkv = jnp.concatenate(
        [p["wq"] * scale, p["wk"], p["wv"]], axis=1).astype(bf16)           # (H, 3H)
    w_o = p["wo"].reshape(NH, HD, H).astype(bf16)                           # (NH, HD, H)
    pad = jnp.zeros((H, GATE_PAD), jnp.float32)

    def gate_pack(wr, wz, wg, ur, uz, ug):
        return jnp.concatenate([wr, wz, wg, pad, ur, uz, ug, pad],
                               axis=1).astype(bf16)                         # (H, 256)

    w_gate1 = gate_pack(p["wr1"], p["wz1"], p["wg1"],
                        p["ur1"], p["uz1"], p["ug1"])
    w_gate2 = gate_pack(p["wr2"], p["wz2"], p["wg2"],
                        p["ur2"], p["uz2"], p["ug2"])
    w_ff1 = p["w1"].astype(bf16)                                            # (H, FF)
    w_ff2 = p["w2"].astype(bf16)                                            # (FF, H)

    def row(v):  # one bias segment per 128-lane row, lane offset 0
        return jnp.pad(v, ((0, 0), (0, 128 - v.shape[1])))

    biases = jnp.concatenate(
        [row(jnp.concatenate([p["bq"] * scale, p["bk"], p["bv"]], axis=1)),
         row(p["bo"]), row(p["bz1"]), row(p["b1"]), row(p["b2"]),
         row(p["bz2"])], axis=0).astype(jnp.float32)                        # (6, 128)
    return gains, biases, w_qkv, w_o, w_gate1, w_ff1, w_ff2, w_gate2


def encoder_layer(x, params):
    b, s, h = x.shape
    gains, biases, w_qkv, w_o, w_g1, w_ff1, w_ff2, w_g2 = pack_params(params)

    # advisory cost estimate for the XLA scheduler
    n = b * s
    flops = (2 * n * h * 3 * h                      # QKV projection
             + 2 * 2 * b * NH * s * s * HD          # scores + PV
             + 2 * n * h * h                        # per-head O projection (total)
             + 2 * (2 * n * h * 3 * h + 2 * n * h * 2 * h + 2 * n * h * h)  # gates
             + 2 * 2 * n * h * FF)                  # FFN
    transcendentals = n * NH * s + n * FF + 6 * n * h + 2 * n
    bytes_accessed = (2 * x.size * 4 + gains.size * 4 + biases.size * 4
                      + 2 * (w_qkv.size + w_o.size + w_g1.size + w_g2.size
                             + w_ff1.size + w_ff2.size))

    in_specs = [
        pl.BlockSpec((b, s, h), lambda i: (0, 0, 0)),                       # x
        pl.BlockSpec(memory_space=pltpu.MemorySpace.SMEM),                  # gains
        pl.BlockSpec(biases.shape, lambda i: (0, 0)),                       # biases (6,128)
        pl.BlockSpec(w_qkv.shape, lambda i: (0, 0)),                        # [Wq'|Wk|Wv]
        pl.BlockSpec(w_o.shape, lambda i: (0, 0, 0)),                       # Wo per head
        pl.BlockSpec(w_g1.shape, lambda i: (0, 0)),                         # gate 1
        pl.BlockSpec(w_ff1.shape, lambda i: (0, 0)),                        # FFN in
        pl.BlockSpec(w_ff2.shape, lambda i: (0, 0)),                        # FFN out
        pl.BlockSpec(w_g2.shape, lambda i: (0, 0)),                         # gate 2
    ]
    return pl.pallas_call(
        encoder_layer_kernel,
        out_shape=jax.ShapeDtypeStruct((b, s, h), x.dtype),
        grid_spec=pltpu.PrefetchScalarGridSpec(
            num_scalar_prefetch=0,
            grid=(1,),                               # whole batch, one grid step
            in_specs=in_specs,
            out_specs=pl.BlockSpec((b, s, h), lambda i: (0, 0, 0)),
        ),
        compiler_params=pltpu.CompilerParams(
            dimension_semantics=("arbitrary",)),
        input_output_aliases={0: 0},
        cost_estimate=pl.CostEstimate(flops=int(flops),
                                      transcendentals=int(transcendentals),
                                      bytes_accessed=int(bytes_accessed)),
    )(x, gains, biases, w_qkv, w_o, w_g1, w_ff1, w_ff2, w_g2)


# -------------------- pure-JAX reference (f32, for sanity check) --------------------
def _ref_scale_norm(x, g):
    nrm = jnp.maximum(jnp.linalg.norm(x, axis=-1, keepdims=True), EPS)
    return x * (g / nrm)


def _ref_gate(x, y, wr, ur, wz, bz, uz, wg, ug):
    r = jax.nn.sigmoid(y @ wr + x @ ur)
    z = jax.nn.sigmoid(y @ wz + bz + x @ uz)
    h = jnp.tanh(y @ wg + (r * x) @ ug)
    return (1.0 - z) * x + z * h


def encoder_layer_ref(x, p):
    xn = _ref_scale_norm(x, p["g1"][0, 0])
    q = xn @ p["wq"] + p["bq"]
    k = xn @ p["wk"] + p["bk"]
    v = xn @ p["wv"] + p["bv"]
    qh = q.reshape(B, S, NH, HD).transpose(0, 2, 1, 3)
    kh = k.reshape(B, S, NH, HD).transpose(0, 2, 1, 3)
    vh = v.reshape(B, S, NH, HD).transpose(0, 2, 1, 3)
    sc = jnp.einsum("bnqd,bnkd->bnqk", qh, kh) / math.sqrt(HD)
    pr = jax.nn.softmax(sc, axis=-1)
    attn = jnp.einsum("bnqk,bnkd->bnqd", pr, vh).transpose(0, 2, 1, 3).reshape(B, S, H)
    y = attn @ p["wo"] + p["bo"]
    x = _ref_gate(x, y, p["wr1"], p["ur1"], p["wz1"], p["bz1"], p["uz1"],
                  p["wg1"], p["ug1"])
    xn = _ref_scale_norm(x, p["g2"][0, 0])
    hff = jax.nn.gelu(xn @ p["w1"] + p["b1"], approximate=False)
    y = hff @ p["w2"] + p["b2"]
    x = _ref_gate(x, y, p["wr2"], p["ur2"], p["wz2"], p["bz2"], p["uz2"],
                  p["wg2"], p["ug2"])
    return x


if __name__ == "__main__":
    key = jax.random.PRNGKey(0)
    kx, kp = jax.random.split(key)
    x = jax.random.normal(kx, (B, S, H), jnp.float32)
    params = init_params(kp)

    ref = encoder_layer_ref(x, params)

    out = encoder_layer(x, params)
    out = jax.block_until_ready(out)

    assert out.shape == (B, S, H)
    # Tolerance accounts for bf16 matmul operands (f32 accumulation) and the
    # approximate softmax reciprocal.
    assert jnp.allclose(out, ref, atol=2e-3, rtol=2e-3), "mismatch vs reference"

    print("KERNEL_OK")
</pallas_src>

<mosaic_0001>
module attributes {stable_mosaic.version = 11 : i64} {
  func.func @encoder_layer_kernel(%arg0: i32, %arg1: memref<2x8x32xf32, #tpu.memory_space<vmem>>, %arg2: memref<2xf32, #tpu.memory_space<smem>>, %arg3: memref<6x128xf32, #tpu.memory_space<vmem>>, %arg4: memref<32x96xbf16, #tpu.memory_space<vmem>>, %arg5: memref<4x8x32xbf16, #tpu.memory_space<vmem>>, %arg6: memref<32x256xbf16, #tpu.memory_space<vmem>>, %arg7: memref<32x64xbf16, #tpu.memory_space<vmem>>, %arg8: memref<64x32xbf16, #tpu.memory_space<vmem>>, %arg9: memref<32x256xbf16, #tpu.memory_space<vmem>>, %arg10: memref<2x8x32xf32, #tpu.memory_space<vmem>>) attributes {dimension_semantics = [#tpu.dimension_semantics<arbitrary>], iteration_bounds = array<i64: 1>, scalar_prefetch = 0 : i64, scratch_operands = 0 : i64, tpu.core_type = #tpu.core_type<tc>, window_params = [{pipeline_mode = #tpu.pipeline_mode<synchronous>, transform_indices = @transform_0, window_bounds = array<i64: 2, 8, 32>}, {transform_indices = @transform_1, window_bounds = array<i64: 2>}, {pipeline_mode = #tpu.pipeline_mode<synchronous>, transform_indices = @transform_2, window_bounds = array<i64: 6, 128>}, {pipeline_mode = #tpu.pipeline_mode<synchronous>, transform_indices = @transform_3, window_bounds = array<i64: 32, 96>}, {pipeline_mode = #tpu.pipeline_mode<synchronous>, transform_indices = @transform_4, window_bounds = array<i64: 4, 8, 32>}, {pipeline_mode = #tpu.pipeline_mode<synchronous>, transform_indices = @transform_5, window_bounds = array<i64: 32, 256>}, {pipeline_mode = #tpu.pipeline_mode<synchronous>, transform_indices = @transform_6, window_bounds = array<i64: 32, 64>}, {pipeline_mode = #tpu.pipeline_mode<synchronous>, transform_indices = @transform_7, window_bounds = array<i64: 64, 32>}, {pipeline_mode = #tpu.pipeline_mode<synchronous>, transform_indices = @transform_8, window_bounds = array<i64: 32, 256>}, {pipeline_mode = #tpu.pipeline_mode<synchronous>, transform_indices = @transform_9, window_bounds = array<i64: 2, 8, 32>}]} {
    %c0 = arith.constant 0 : index
    %c0_0 = arith.constant 0 : index
    %c0_1 = arith.constant 0 : index
    %0 = vector.load %arg1[%c0, %c0_0, %c0_1] : memref<2x8x32xf32, #tpu.memory_space<vmem>>, vector<2x8x32xf32>
    %1 = vector.shape_cast %0 : vector<2x8x32xf32> to vector<16x32xf32>
    %c0_2 = arith.constant 0 : index
    %c0_3 = arith.constant 0 : index
    %2 = vector.load %arg3[%c0_2, %c0_3] : memref<6x128xf32, #tpu.memory_space<vmem>>, vector<6x128xf32>
    %c0_4 = arith.constant 0 : index
    %3 = memref.load %arg2[%c0_4] : memref<2xf32, #tpu.memory_space<smem>>
    %4 = arith.mulf %1, %1 : vector<16x32xf32>
    %cst = arith.constant dense<0.000000e+00> : vector<16xf32>
    %5 = vector.multi_reduction <add>, %4, %cst [1] : vector<16x32xf32> to vector<16xf32>
    %6 = vector.shape_cast %5 : vector<16xf32> to vector<16x1xf32>
    %cst_5 = arith.constant 9.99999996E-13 : f32
    %7 = vector.broadcast %cst_5 : f32 to vector<16x1xf32>
    %8 = arith.maximumf %6, %7 : vector<16x1xf32>
    %9 = math.rsqrt %8 : vector<16x1xf32>
    %10 = vector.broadcast %3 : f32 to vector<16x1xf32>
    %11 = arith.mulf %10, %9 : vector<16x1xf32>
    %12 = vector.broadcast %11 : vector<16x1xf32> to vector<16x32xf32>
    %13 = arith.mulf %1, %12 : vector<16x32xf32>
    %14 = arith.truncf %13 : vector<16x32xf32> to vector<16x32xbf16>
    %c0_6 = arith.constant 0 : index
    %c0_7 = arith.constant 0 : index
    %15 = vector.load %arg4[%c0_6, %c0_7] : memref<32x96xbf16, #tpu.memory_space<vmem>>, vector<32x96xbf16>
    %cst_8 = arith.constant dense<0.000000e+00> : vector<16x96xf32>
    %16 = tpu.matmul %14, %15, %cst_8 {dimension_numbers = #tpu.dot_dimension_numbers<[1], [0], [0], [1], [0, 0, 1, 1], [], []>} : vector<16x32xbf16>, vector<32x96xbf16>, vector<16x96xf32> -> vector<16x96xf32>
    %17 = vector.extract_strided_slice %2 {offsets = [0, 0], sizes = [1, 96], strides = [1, 1]} : vector<6x128xf32> to vector<1x96xf32>
    %18 = vector.broadcast %17 : vector<1x96xf32> to vector<16x96xf32>
    %19 = arith.addf %16, %18 : vector<16x96xf32>
    %20 = vector.extract_strided_slice %19 {offsets = [0, 0], sizes = [16, 32], strides = [1, 1]} : vector<16x96xf32> to vector<16x32xf32>
    %21 = vector.shape_cast %20 : vector<16x32xf32> to vector<2x8x32xf32>
    %22 = vector.extract_strided_slice %19 {offsets = [0, 32], sizes = [16, 32], strides = [1, 1]} : vector<16x96xf32> to vector<16x32xf32>
    %23 = vector.shape_cast %22 : vector<16x32xf32> to vector<2x8x32xf32>
    %24 = vector.extract_strided_slice %19 {offsets = [0, 64], sizes = [16, 32], strides = [1, 1]} : vector<16x96xf32> to vector<16x32xf32>
    %25 = vector.shape_cast %24 : vector<16x32xf32> to vector<2x8x32xf32>
    %cst_9 = arith.constant 0.000000e+00 : f32
    %26 = vector.broadcast %cst_9 : f32 to vector<16x32xf32>
    %27 = vector.extract_strided_slice %2 {offsets = [1, 0], sizes = [1, 32], strides = [1, 1]} : vector<6x128xf32> to vector<1x32xf32>
    %28 = vector.broadcast %27 : vector<1x32xf32> to vector<16x32xf32>
    %29 = arith.addf %26, %28 : vector<16x32xf32>
    %30 = vector.extract_strided_slice %21 {offsets = [0, 0, 0], sizes = [2, 8, 8], strides = [1, 1, 1]} : vector<2x8x32xf32> to vector<2x8x8xf32>
    %31 = arith.truncf %30 : vector<2x8x8xf32> to vector<2x8x8xbf16>
    %32 = vector.extract_strided_slice %23 {offsets = [0, 0, 0], sizes = [2, 8, 8], strides = [1, 1, 1]} : vector<2x8x32xf32> to vector<2x8x8xf32>
    %33 = arith.truncf %32 : vector<2x8x8xf32> to vector<2x8x8xbf16>
    %34 = vector.extract_strided_slice %25 {offsets = [0, 0, 0], sizes = [2, 8, 8], strides = [1, 1, 1]} : vector<2x8x32xf32> to vector<2x8x8xf32>
    %35 = arith.truncf %34 : vector<2x8x8xf32> to vector<2x8x8xbf16>
    "tpu.trace_start"() <{level = 10 : i32, message = "bqd,bkd->bqk"}> : () -> ()
    %cst_10 = arith.constant dense<0.000000e+00> : vector<2x8x8xf32>
    %36 = tpu.matmul %31, %33, %cst_10 {dimension_numbers = #tpu.dot_dimension_numbers<[2], [2], [1], [1], [0, 0, 0, 1, 1, 1], [0], [0]>} : vector<2x8x8xbf16>, vector<2x8x8xbf16>, vector<2x8x8xf32> -> vector<2x8x8xf32>
    "tpu.trace_stop"() : () -> ()
    %cst_11 = arith.constant dense<0xFF800000> : vector<2x8xf32>
    %37 = vector.multi_reduction <maximumf>, %36, %cst_11 [2] : vector<2x8x8xf32> to vector<2x8xf32>
    %38 = vector.shape_cast %37 : vector<2x8xf32> to vector<2x8x1xf32>
    %39 = vector.broadcast %38 : vector<2x8x1xf32> to vector<2x8x8xf32>
    %40 = arith.subf %36, %39 : vector<2x8x8xf32>
    %41 = math.exp %40 : vector<2x8x8xf32>
    %cst_12 = arith.constant dense<0.000000e+00> : vector<2x8xf32>
    %42 = vector.multi_reduction <add>, %41, %cst_12 [2] : vector<2x8x8xf32> to vector<2x8xf32>
    %43 = vector.shape_cast %42 : vector<2x8xf32> to vector<2x8x1xf32>
    %44 = tpu.reciprocal %43 {approx = true} : vector<2x8x1xf32> -> vector<2x8x1xf32>
    %45 = vector.broadcast %44 : vector<2x8x1xf32> to vector<2x8x8xf32>
    %46 = arith.mulf %41, %45 : vector<2x8x8xf32>
    %47 = arith.truncf %46 : vector<2x8x8xf32> to vector<2x8x8xbf16>
    "tpu.trace_start"() <{level = 10 : i32, message = "bqk,bkd->bqd"}> : () -> ()
    %cst_13 = arith.constant dense<0.000000e+00> : vector<2x8x8xf32>
    %48 = tpu.matmul %47, %35, %cst_13 {dimension_numbers = #tpu.dot_dimension_numbers<[2], [1], [1], [2], [0, 0, 0, 1, 1, 2], [0], [0]>} : vector<2x8x8xbf16>, vector<2x8x8xbf16>, vector<2x8x8xf32> -> vector<2x8x8xf32>
    "tpu.trace_stop"() : () -> ()
    %49 = vector.shape_cast %48 : vector<2x8x8xf32> to vector<16x8xf32>
    %50 = arith.truncf %49 : vector<16x8xf32> to vector<16x8xbf16>
    %c0_14 = arith.constant 0 : index
    %c0_15 = arith.constant 0 : index
    %c0_16 = arith.constant 0 : index
    %51 = vector.load %arg5[%c0_14, %c0_15, %c0_16] : memref<4x8x32xbf16, #tpu.memory_space<vmem>>, vector<1x8x32xbf16>
    %52 = vector.shape_cast %51 : vector<1x8x32xbf16> to vector<8x32xbf16>
    %cst_17 = arith.constant dense<0.000000e+00> : vector<16x32xf32>
    %53 = tpu.matmul %50, %52, %cst_17 {dimension_numbers = #tpu.dot_dimension_numbers<[1], [0], [0], [1], [0, 0, 1, 1], [], []>} : vector<16x8xbf16>, vector<8x32xbf16>, vector<16x32xf32> -> vector<16x32xf32>
    %54 = arith.addf %29, %53 : vector<16x32xf32>
    %55 = vector.extract_strided_slice %21 {offsets = [0, 0, 8], sizes = [2, 8, 8], strides = [1, 1, 1]} : vector<2x8x32xf32> to vector<2x8x8xf32>
    %56 = arith.truncf %55 : vector<2x8x8xf32> to vector<2x8x8xbf16>
    %57 = vector.extract_strided_slice %23 {offsets = [0, 0, 8], sizes = [2, 8, 8], strides = [1, 1, 1]} : vector<2x8x32xf32> to vector<2x8x8xf32>
    %58 = arith.truncf %57 : vector<2x8x8xf32> to vector<2x8x8xbf16>
    %59 = vector.extract_strided_slice %25 {offsets = [0, 0, 8], sizes = [2, 8, 8], strides = [1, 1, 1]} : vector<2x8x32xf32> to vector<2x8x8xf32>
    %60 = arith.truncf %59 : vector<2x8x8xf32> to vector<2x8x8xbf16>
    "tpu.trace_start"() <{level = 10 : i32, message = "bqd,bkd->bqk"}> : () -> ()
    %cst_18 = arith.constant dense<0.000000e+00> : vector<2x8x8xf32>
    %61 = tpu.matmul %56, %58, %cst_18 {dimension_numbers = #tpu.dot_dimension_numbers<[2], [2], [1], [1], [0, 0, 0, 1, 1, 1], [0], [0]>} : vector<2x8x8xbf16>, vector<2x8x8xbf16>, vector<2x8x8xf32> -> vector<2x8x8xf32>
    "tpu.trace_stop"() : () -> ()
    %cst_19 = arith.constant dense<0xFF800000> : vector<2x8xf32>
    %62 = vector.multi_reduction <maximumf>, %61, %cst_19 [2] : vector<2x8x8xf32> to vector<2x8xf32>
    %63 = vector.shape_cast %62 : vector<2x8xf32> to vector<2x8x1xf32>
    %64 = vector.broadcast %63 : vector<2x8x1xf32> to vector<2x8x8xf32>
    %65 = arith.subf %61, %64 : vector<2x8x8xf32>
    %66 = math.exp %65 : vector<2x8x8xf32>
    %cst_20 = arith.constant dense<0.000000e+00> : vector<2x8xf32>
    %67 = vector.multi_reduction <add>, %66, %cst_20 [2] : vector<2x8x8xf32> to vector<2x8xf32>
    %68 = vector.shape_cast %67 : vector<2x8xf32> to vector<2x8x1xf32>
    %69 = tpu.reciprocal %68 {approx = true} : vector<2x8x1xf32> -> vector<2x8x1xf32>
    %70 = vector.broadcast %69 : vector<2x8x1xf32> to vector<2x8x8xf32>
    %71 = arith.mulf %66, %70 : vector<2x8x8xf32>
    %72 = arith.truncf %71 : vector<2x8x8xf32> to vector<2x8x8xbf16>
    "tpu.trace_start"() <{level = 10 : i32, message = "bqk,bkd->bqd"}> : () -> ()
    %cst_21 = arith.constant dense<0.000000e+00> : vector<2x8x8xf32>
    %73 = tpu.matmul %72, %60, %cst_21 {dimension_numbers = #tpu.dot_dimension_numbers<[2], [1], [1], [2], [0, 0, 0, 1, 1, 2], [0], [0]>} : vector<2x8x8xbf16>, vector<2x8x8xbf16>, vector<2x8x8xf32> -> vector<2x8x8xf32>
    "tpu.trace_stop"() : () -> ()
    %74 = vector.shape_cast %73 : vector<2x8x8xf32> to vector<16x8xf32>
    %75 = arith.truncf %74 : vector<16x8xf32> to vector<16x8xbf16>
    %c1 = arith.constant 1 : index
    %c0_22 = arith.constant 0 : index
    %c0_23 = arith.constant 0 : index
    %76 = vector.load %arg5[%c1, %c0_22, %c0_23] : memref<4x8x32xbf16, #tpu.memory_space<vmem>>, vector<1x8x32xbf16>
    %77 = vector.shape_cast %76 : vector<1x8x32xbf16> to vector<8x32xbf16>
    %cst_24 = arith.constant dense<0.000000e+00> : vector<16x32xf32>
    %78 = tpu.matmul %75, %77, %cst_24 {dimension_numbers = #tpu.dot_dimension_numbers<[1], [0], [0], [1], [0, 0, 1, 1], [], []>} : vector<16x8xbf16>, vector<8x32xbf16>, vector<16x32xf32> -> vector<16x32xf32>
    %79 = arith.addf %54, %78 : vector<16x32xf32>
    %80 = vector.extract_strided_slice %21 {offsets = [0, 0, 16], sizes = [2, 8, 8], strides = [1, 1, 1]} : vector<2x8x32xf32> to vector<2x8x8xf32>
    %81 = arith.truncf %80 : vector<2x8x8xf32> to vector<2x8x8xbf16>
    %82 = vector.extract_strided_slice %23 {offsets = [0, 0, 16], sizes = [2, 8, 8], strides = [1, 1, 1]} : vector<2x8x32xf32> to vector<2x8x8xf32>
    %83 = arith.truncf %82 : vector<2x8x8xf32> to vector<2x8x8xbf16>
    %84 = vector.extract_strided_slice %25 {offsets = [0, 0, 16], sizes = [2, 8, 8], strides = [1, 1, 1]} : vector<2x8x32xf32> to vector<2x8x8xf32>
    %85 = arith.truncf %84 : vector<2x8x8xf32> to vector<2x8x8xbf16>
    "tpu.trace_start"() <{level = 10 : i32, message = "bqd,bkd->bqk"}> : () -> ()
    %cst_25 = arith.constant dense<0.000000e+00> : vector<2x8x8xf32>
    %86 = tpu.matmul %81, %83, %cst_25 {dimension_numbers = #tpu.dot_dimension_numbers<[2], [2], [1], [1], [0, 0, 0, 1, 1, 1], [0], [0]>} : vector<2x8x8xbf16>, vector<2x8x8xbf16>, vector<2x8x8xf32> -> vector<2x8x8xf32>
    "tpu.trace_stop"() : () -> ()
    %cst_26 = arith.constant dense<0xFF800000> : vector<2x8xf32>
    %87 = vector.multi_reduction <maximumf>, %86, %cst_26 [2] : vector<2x8x8xf32> to vector<2x8xf32>
    %88 = vector.shape_cast %87 : vector<2x8xf32> to vector<2x8x1xf32>
    %89 = vector.broadcast %88 : vector<2x8x1xf32> to vector<2x8x8xf32>
    %90 = arith.subf %86, %89 : vector<2x8x8xf32>
    %91 = math.exp %90 : vector<2x8x8xf32>
    %cst_27 = arith.constant dense<0.000000e+00> : vector<2x8xf32>
    %92 = vector.multi_reduction <add>, %91, %cst_27 [2] : vector<2x8x8xf32> to vector<2x8xf32>
    %93 = vector.shape_cast %92 : vector<2x8xf32> to vector<2x8x1xf32>
    %94 = tpu.reciprocal %93 {approx = true} : vector<2x8x1xf32> -> vector<2x8x1xf32>
    %95 = vector.broadcast %94 : vector<2x8x1xf32> to vector<2x8x8xf32>
    %96 = arith.mulf %91, %95 : vector<2x8x8xf32>
    %97 = arith.truncf %96 : vector<2x8x8xf32> to vector<2x8x8xbf16>
    "tpu.trace_start"() <{level = 10 : i32, message = "bqk,bkd->bqd"}> : () -> ()
    %cst_28 = arith.constant dense<0.000000e+00> : vector<2x8x8xf32>
    %98 = tpu.matmul %97, %85, %cst_28 {dimension_numbers = #tpu.dot_dimension_numbers<[2], [1], [1], [2], [0, 0, 0, 1, 1, 2], [0], [0]>} : vector<2x8x8xbf16>, vector<2x8x8xbf16>, vector<2x8x8xf32> -> vector<2x8x8xf32>
    "tpu.trace_stop"() : () -> ()
    %99 = vector.shape_cast %98 : vector<2x8x8xf32> to vector<16x8xf32>
    %100 = arith.truncf %99 : vector<16x8xf32> to vector<16x8xbf16>
    %c2 = arith.constant 2 : index
    %c0_29 = arith.constant 0 : index
    %c0_30 = arith.constant 0 : index
    %101 = vector.load %arg5[%c2, %c0_29, %c0_30] : memref<4x8x32xbf16, #tpu.memory_space<vmem>>, vector<1x8x32xbf16>
    %102 = vector.shape_cast %101 : vector<1x8x32xbf16> to vector<8x32xbf16>
    %cst_31 = arith.constant dense<0.000000e+00> : vector<16x32xf32>
    %103 = tpu.matmul %100, %102, %cst_31 {dimension_numbers = #tpu.dot_dimension_numbers<[1], [0], [0], [1], [0, 0, 1, 1], [], []>} : vector<16x8xbf16>, vector<8x32xbf16>, vector<16x32xf32> -> vector<16x32xf32>
    %104 = arith.addf %79, %103 : vector<16x32xf32>
    %105 = vector.extract_strided_slice %21 {offsets = [0, 0, 24], sizes = [2, 8, 8], strides = [1, 1, 1]} : vector<2x8x32xf32> to vector<2x8x8xf32>
    %106 = arith.truncf %105 : vector<2x8x8xf32> to vector<2x8x8xbf16>
    %107 = vector.extract_strided_slice %23 {offsets = [0, 0, 24], sizes = [2, 8, 8], strides = [1, 1, 1]} : vector<2x8x32xf32> to vector<2x8x8xf32>
    %108 = arith.truncf %107 : vector<2x8x8xf32> to vector<2x8x8xbf16>
    %109 = vector.extract_strided_slice %25 {offsets = [0, 0, 24], sizes = [2, 8, 8], strides = [1, 1, 1]} : vector<2x8x32xf32> to vector<2x8x8xf32>
    %110 = arith.truncf %109 : vector<2x8x8xf32> to vector<2x8x8xbf16>
    "tpu.trace_start"() <{level = 10 : i32, message = "bqd,bkd->bqk"}> : () -> ()
    %cst_32 = arith.constant dense<0.000000e+00> : vector<2x8x8xf32>
    %111 = tpu.matmul %106, %108, %cst_32 {dimension_numbers = #tpu.dot_dimension_numbers<[2], [2], [1], [1], [0, 0, 0, 1, 1, 1], [0], [0]>} : vector<2x8x8xbf16>, vector<2x8x8xbf16>, vector<2x8x8xf32> -> vector<2x8x8xf32>
    "tpu.trace_stop"() : () -> ()
    %cst_33 = arith.constant dense<0xFF800000> : vector<2x8xf32>
    %112 = vector.multi_reduction <maximumf>, %111, %cst_33 [2] : vector<2x8x8xf32> to vector<2x8xf32>
    %113 = vector.shape_cast %112 : vector<2x8xf32> to vector<2x8x1xf32>
    %114 = vector.broadcast %113 : vector<2x8x1xf32> to vector<2x8x8xf32>
    %115 = arith.subf %111, %114 : vector<2x8x8xf32>
    %116 = math.exp %115 : vector<2x8x8xf32>
    %cst_34 = arith.constant dense<0.000000e+00> : vector<2x8xf32>
    %117 = vector.multi_reduction <add>, %116, %cst_34 [2] : vector<2x8x8xf32> to vector<2x8xf32>
    %118 = vector.shape_cast %117 : vector<2x8xf32> to vector<2x8x1xf32>
    %119 = tpu.reciprocal %118 {approx = true} : vector<2x8x1xf32> -> vector<2x8x1xf32>
    %120 = vector.broadcast %119 : vector<2x8x1xf32> to vector<2x8x8xf32>
    %121 = arith.mulf %116, %120 : vector<2x8x8xf32>
    %122 = arith.truncf %121 : vector<2x8x8xf32> to vector<2x8x8xbf16>
    "tpu.trace_start"() <{level = 10 : i32, message = "bqk,bkd->bqd"}> : () -> ()
    %cst_35 = arith.constant dense<0.000000e+00> : vector<2x8x8xf32>
    %123 = tpu.matmul %122, %110, %cst_35 {dimension_numbers = #tpu.dot_dimension_numbers<[2], [1], [1], [2], [0, 0, 0, 1, 1, 2], [0], [0]>} : vector<2x8x8xbf16>, vector<2x8x8xbf16>, vector<2x8x8xf32> -> vector<2x8x8xf32>
    "tpu.trace_stop"() : () -> ()
    %124 = vector.shape_cast %123 : vector<2x8x8xf32> to vector<16x8xf32>
    %125 = arith.truncf %124 : vector<16x8xf32> to vector<16x8xbf16>
    %c3 = arith.constant 3 : index
    %c0_36 = arith.constant 0 : index
    %c0_37 = arith.constant 0 : index
    %126 = vector.load %arg5[%c3, %c0_36, %c0_37] : memref<4x8x32xbf16, #tpu.memory_space<vmem>>, vector<1x8x32xbf16>
    %127 = vector.shape_cast %126 : vector<1x8x32xbf16> to vector<8x32xbf16>
    %cst_38 = arith.constant dense<0.000000e+00> : vector<16x32xf32>
    %128 = tpu.matmul %125, %127, %cst_38 {dimension_numbers = #tpu.dot_dimension_numbers<[1], [0], [0], [1], [0, 0, 1, 1], [], []>} : vector<16x8xbf16>, vector<8x32xbf16>, vector<16x32xf32> -> vector<16x32xf32>
    %129 = arith.addf %104, %128 : vector<16x32xf32>
    %c0_39 = arith.constant 0 : index
    %c0_40 = arith.constant 0 : index
    %130 = vector.load %arg6[%c0_39, %c0_40] : memref<32x256xbf16, #tpu.memory_space<vmem>>, vector<32x256xbf16>
    %131 = vector.extract_strided_slice %2 {offsets = [2, 0], sizes = [1, 32], strides = [1, 1]} : vector<6x128xf32> to vector<1x32xf32>
    %132 = arith.truncf %129 : vector<16x32xf32> to vector<16x32xbf16>
    %133 = arith.truncf %1 : vector<16x32xf32> to vector<16x32xbf16>
    %134 = vector.extract_strided_slice %130 {offsets = [0, 0], sizes = [32, 96], strides = [1, 1]} : vector<32x256xbf16> to vector<32x96xbf16>
    %cst_41 = arith.constant dense<0.000000e+00> : vector<16x96xf32>
    %135 = tpu.matmul %132, %134, %cst_41 {dimension_numbers = #tpu.dot_dimension_numbers<[1], [0], [0], [1], [0, 0, 1, 1], [], []>} : vector<16x32xbf16>, vector<32x96xbf16>, vector<16x96xf32> -> vector<16x96xf32>
    %136 = vector.extract_strided_slice %130 {offsets = [0, 128], sizes = [32, 64], strides = [1, 1]} : vector<32x256xbf16> to vector<32x64xbf16>
    %cst_42 = arith.constant dense<0.000000e+00> : vector<16x64xf32>
    %137 = tpu.matmul %133, %136, %cst_42 {dimension_numbers = #tpu.dot_dimension_numbers<[1], [0], [0], [1], [0, 0, 1, 1], [], []>} : vector<16x32xbf16>, vector<32x64xbf16>, vector<16x64xf32> -> vector<16x64xf32>
    %138 = vector.extract_strided_slice %135 {offsets = [0, 0], sizes = [16, 32], strides = [1, 1]} : vector<16x96xf32> to vector<16x32xf32>
    %139 = vector.extract_strided_slice %137 {offsets = [0, 0], sizes = [16, 32], strides = [1, 1]} : vector<16x64xf32> to vector<16x32xf32>
    %140 = arith.addf %138, %139 : vector<16x32xf32>
    %141 = arith.negf %140 : vector<16x32xf32>
    %142 = math.exp %141 : vector<16x32xf32>
    %cst_43 = arith.constant 1.000000e+00 : f32
    %143 = vector.broadcast %cst_43 : f32 to vector<16x32xf32>
    %144 = arith.addf %143, %142 : vector<16x32xf32>
    %145 = arith.divf %143, %144 : vector<16x32xf32>
    %146 = vector.extract_strided_slice %135 {offsets = [0, 32], sizes = [16, 32], strides = [1, 1]} : vector<16x96xf32> to vector<16x32xf32>
    %147 = vector.broadcast %131 : vector<1x32xf32> to vector<16x32xf32>
    %148 = arith.addf %146, %147 : vector<16x32xf32>
    %149 = vector.extract_strided_slice %137 {offsets = [0, 32], sizes = [16, 32], strides = [1, 1]} : vector<16x64xf32> to vector<16x32xf32>
    %150 = arith.addf %148, %149 : vector<16x32xf32>
    %151 = arith.negf %150 : vector<16x32xf32>
    %152 = math.exp %151 : vector<16x32xf32>
    %cst_44 = arith.constant 1.000000e+00 : f32
    %153 = vector.broadcast %cst_44 : f32 to vector<16x32xf32>
    %154 = arith.addf %153, %152 : vector<16x32xf32>
    %155 = arith.divf %153, %154 : vector<16x32xf32>
    %156 = vector.extract_strided_slice %135 {offsets = [0, 64], sizes = [16, 32], strides = [1, 1]} : vector<16x96xf32> to vector<16x32xf32>
    %157 = arith.mulf %145, %1 : vector<16x32xf32>
    %158 = arith.truncf %157 : vector<16x32xf32> to vector<16x32xbf16>
    %159 = vector.extract_strided_slice %130 {offsets = [0, 192], sizes = [32, 32], strides = [1, 1]} : vector<32x256xbf16> to vector<32x32xbf16>
    %cst_45 = arith.constant dense<0.000000e+00> : vector<16x32xf32>
    %160 = tpu.matmul %158, %159, %cst_45 {dimension_numbers = #tpu.dot_dimension_numbers<[1], [0], [0], [1], [0, 0, 1, 1], [], []>} : vector<16x32xbf16>, vector<32x32xbf16>, vector<16x32xf32> -> vector<16x32xf32>
    %161 = arith.addf %156, %160 : vector<16x32xf32>
    %162 = math.tanh %161 : vector<16x32xf32>
    %cst_46 = arith.constant 1.000000e+00 : f32
    %163 = vector.broadcast %cst_46 : f32 to vector<16x32xf32>
    %164 = arith.subf %163, %155 : vector<16x32xf32>
    %165 = arith.mulf %164, %1 : vector<16x32xf32>
    %166 = arith.mulf %155, %162 : vector<16x32xf32>
    %167 = arith.addf %165, %166 : vector<16x32xf32>
    %c1_47 = arith.constant 1 : index
    %168 = memref.load %arg2[%c1_47] : memref<2xf32, #tpu.memory_space<smem>>
    %169 = arith.mulf %167, %167 : vector<16x32xf32>
    %cst_48 = arith.constant dense<0.000000e+00> : vector<16xf32>
    %170 = vector.multi_reduction <add>, %169, %cst_48 [1] : vector<16x32xf32> to vector<16xf32>
    %171 = vector.shape_cast %170 : vector<16xf32> to vector<16x1xf32>
    %cst_49 = arith.constant 9.99999996E-13 : f32
    %172 = vector.broadcast %cst_49 : f32 to vector<16x1xf32>
    %173 = arith.maximumf %171, %172 : vector<16x1xf32>
    %174 = math.rsqrt %173 : vector<16x1xf32>
    %175 = vector.broadcast %168 : f32 to vector<16x1xf32>
    %176 = arith.mulf %175, %174 : vector<16x1xf32>
    %177 = vector.broadcast %176 : vector<16x1xf32> to vector<16x32xf32>
    %178 = arith.mulf %167, %177 : vector<16x32xf32>
    %179 = arith.truncf %178 : vector<16x32xf32> to vector<16x32xbf16>
    %c0_50 = arith.constant 0 : index
    %c0_51 = arith.constant 0 : index
    %180 = vector.load %arg7[%c0_50, %c0_51] : memref<32x64xbf16, #tpu.memory_space<vmem>>, vector<32x64xbf16>
    %cst_52 = arith.constant dense<0.000000e+00> : vector<16x64xf32>
    %181 = tpu.matmul %179, %180, %cst_52 {dimension_numbers = #tpu.dot_dimension_numbers<[1], [0], [0], [1], [0, 0, 1, 1], [], []>} : vector<16x32xbf16>, vector<32x64xbf16>, vector<16x64xf32> -> vector<16x64xf32>
    %182 = vector.extract_strided_slice %2 {offsets = [3, 0], sizes = [1, 64], strides = [1, 1]} : vector<6x128xf32> to vector<1x64xf32>
    %183 = vector.broadcast %182 : vector<1x64xf32> to vector<16x64xf32>
    %184 = arith.addf %181, %183 : vector<16x64xf32>
    %cst_53 = arith.constant 5.000000e-01 : f32
    %185 = vector.broadcast %cst_53 : f32 to vector<16x64xf32>
    %186 = arith.mulf %184, %185 : vector<16x64xf32>
    %cst_54 = arith.constant 1.41421354 : f32
    %187 = vector.broadcast %cst_54 : f32 to vector<16x64xf32>
    %188 = arith.divf %184, %187 : vector<16x64xf32>
    %189 = math.erf %188 : vector<16x64xf32>
    %cst_55 = arith.constant 1.000000e+00 : f32
    %190 = vector.broadcast %cst_55 : f32 to vector<16x64xf32>
    %191 = arith.addf %190, %189 : vector<16x64xf32>
    %192 = arith.mulf %186, %191 : vector<16x64xf32>
    %193 = arith.truncf %192 : vector<16x64xf32> to vector<16x64xbf16>
    %c0_56 = arith.constant 0 : index
    %c0_57 = arith.constant 0 : index
    %194 = vector.load %arg8[%c0_56, %c0_57] : memref<64x32xbf16, #tpu.memory_space<vmem>>, vector<64x32xbf16>
    %cst_58 = arith.constant dense<0.000000e+00> : vector<16x32xf32>
    %195 = tpu.matmul %193, %194, %cst_58 {dimension_numbers = #tpu.dot_dimension_numbers<[1], [0], [0], [1], [0, 0, 1, 1], [], []>} : vector<16x64xbf16>, vector<64x32xbf16>, vector<16x32xf32> -> vector<16x32xf32>
    %196 = vector.extract_strided_slice %2 {offsets = [4, 0], sizes = [1, 32], strides = [1, 1]} : vector<6x128xf32> to vector<1x32xf32>
    %197 = vector.broadcast %196 : vector<1x32xf32> to vector<16x32xf32>
    %198 = arith.addf %195, %197 : vector<16x32xf32>
    %c0_59 = arith.constant 0 : index
    %c0_60 = arith.constant 0 : index
    %199 = vector.load %arg9[%c0_59, %c0_60] : memref<32x256xbf16, #tpu.memory_space<vmem>>, vector<32x256xbf16>
    %200 = vector.extract_strided_slice %2 {offsets = [5, 0], sizes = [1, 32], strides = [1, 1]} : vector<6x128xf32> to vector<1x32xf32>
    %201 = arith.truncf %198 : vector<16x32xf32> to vector<16x32xbf16>
    %202 = arith.truncf %167 : vector<16x32xf32> to vector<16x32xbf16>
    %203 = vector.extract_strided_slice %199 {offsets = [0, 0], sizes = [32, 96], strides = [1, 1]} : vector<32x256xbf16> to vector<32x96xbf16>
    %cst_61 = arith.constant dense<0.000000e+00> : vector<16x96xf32>
    %204 = tpu.matmul %201, %203, %cst_61 {dimension_numbers = #tpu.dot_dimension_numbers<[1], [0], [0], [1], [0, 0, 1, 1], [], []>} : vector<16x32xbf16>, vector<32x96xbf16>, vector<16x96xf32> -> vector<16x96xf32>
    %205 = vector.extract_strided_slice %199 {offsets = [0, 128], sizes = [32, 64], strides = [1, 1]} : vector<32x256xbf16> to vector<32x64xbf16>
    %cst_62 = arith.constant dense<0.000000e+00> : vector<16x64xf32>
    %206 = tpu.matmul %202, %205, %cst_62 {dimension_numbers = #tpu.dot_dimension_numbers<[1], [0], [0], [1], [0, 0, 1, 1], [], []>} : vector<16x32xbf16>, vector<32x64xbf16>, vector<16x64xf32> -> vector<16x64xf32>
    %207 = vector.extract_strided_slice %204 {offsets = [0, 0], sizes = [16, 32], strides = [1, 1]} : vector<16x96xf32> to vector<16x32xf32>
    %208 = vector.extract_strided_slice %206 {offsets = [0, 0], sizes = [16, 32], strides = [1, 1]} : vector<16x64xf32> to vector<16x32xf32>
    %209 = arith.addf %207, %208 : vector<16x32xf32>
    %210 = arith.negf %209 : vector<16x32xf32>
    %211 = math.exp %210 : vector<16x32xf32>
    %cst_63 = arith.constant 1.000000e+00 : f32
    %212 = vector.broadcast %cst_63 : f32 to vector<16x32xf32>
    %213 = arith.addf %212, %211 : vector<16x32xf32>
    %214 = arith.divf %212, %213 : vector<16x32xf32>
    %215 = vector.extract_strided_slice %204 {offsets = [0, 32], sizes = [16, 32], strides = [1, 1]} : vector<16x96xf32> to vector<16x32xf32>
    %216 = vector.broadcast %200 : vector<1x32xf32> to vector<16x32xf32>
    %217 = arith.addf %215, %216 : vector<16x32xf32>
    %218 = vector.extract_strided_slice %206 {offsets = [0, 32], sizes = [16, 32], strides = [1, 1]} : vector<16x64xf32> to vector<16x32xf32>
    %219 = arith.addf %217, %218 : vector<16x32xf32>
    %220 = arith.negf %219 : vector<16x32xf32>
    %221 = math.exp %220 : vector<16x32xf32>
    %cst_64 = arith.constant 1.000000e+00 : f32
    %222 = vector.broadcast %cst_64 : f32 to vector<16x32xf32>
    %223 = arith.addf %222, %221 : vector<16x32xf32>
    %224 = arith.divf %222, %223 : vector<16x32xf32>
    %225 = vector.extract_strided_slice %204 {offsets = [0, 64], sizes = [16, 32], strides = [1, 1]} : vector<16x96xf32> to vector<16x32xf32>
    %226 = arith.mulf %214, %167 : vector<16x32xf32>
    %227 = arith.truncf %226 : vector<16x32xf32> to vector<16x32xbf16>
    %228 = vector.extract_strided_slice %199 {offsets = [0, 192], sizes = [32, 32], strides = [1, 1]} : vector<32x256xbf16> to vector<32x32xbf16>
    %cst_65 = arith.constant dense<0.000000e+00> : vector<16x32xf32>
    %229 = tpu.matmul %227, %228, %cst_65 {dimension_numbers = #tpu.dot_dimension_numbers<[1], [0], [0], [1], [0, 0, 1, 1], [], []>} : vector<16x32xbf16>, vector<32x32xbf16>, vector<16x32xf32> -> vector<16x32xf32>
    %230 = arith.addf %225, %229 : vector<16x32xf32>
    %231 = math.tanh %230 : vector<16x32xf32>
    %cst_66 = arith.constant 1.000000e+00 : f32
    %232 = vector.broadcast %cst_66 : f32 to vector<16x32xf32>
    %233 = arith.subf %232, %224 : vector<16x32xf32>
    %234 = arith.mulf %233, %167 : vector<16x32xf32>
    %235 = arith.mulf %224, %231 : vector<16x32xf32>
    %236 = arith.addf %234, %235 : vector<16x32xf32>
    %237 = vector.shape_cast %236 : vector<16x32xf32> to vector<2x8x32xf32>
    %c0_67 = arith.constant 0 : index
    %c0_68 = arith.constant 0 : index
    %c0_69 = arith.constant 0 : index
    %238 = vector.load %arg10[%c0_67, %c0_68, %c0_69] : memref<2x8x32xf32, #tpu.memory_space<vmem>>, vector<2x8x32xf32>
    tpu.vector_store %arg10[%c0_67, %c0_68, %c0_69], %237 {strides = array<i32>} : memref<2x8x32xf32, #tpu.memory_space<vmem>>, vector<2x8x32xf32>,
    return
  }
  func.func @transform_0(%arg0: i32) -> (i32, i32, i32) {
    %c0_i32 = arith.constant 0 : i32
    %c0_i32_0 = arith.constant 0 : i32
    %c0_i32_1 = arith.constant 0 : i32
    %c0_i32_2 = arith.constant 0 : i32
    return %c0_i32, %c0_i32_0, %c0_i32_1 : i32, i32, i32
  }
  func.func @transform_1(%arg0: i32) -> i32 {
    %c0_i32 = arith.constant 0 : i32
    %c0_i32_0 = arith.constant 0 : i32
    return %c0_i32 : i32
  }
  func.func @transform_2(%arg0: i32) -> (i32, i32) {
    %c0_i32 = arith.constant 0 : i32
    %c0_i32_0 = arith.constant 0 : i32
    %c0_i32_1 = arith.constant 0 : i32
    return %c0_i32, %c0_i32_0 : i32, i32
  }
  func.func @transform_3(%arg0: i32) -> (i32, i32) {
    %c0_i32 = arith.constant 0 : i32
    %c0_i32_0 = arith.constant 0 : i32
    %c0_i32_1 = arith.constant 0 : i32
    return %c0_i32, %c0_i32_0 : i32, i32
  }
  func.func @transform_4(%arg0: i32) -> (i32, i32, i32) {
    %c0_i32 = arith.constant 0 : i32
    %c0_i32_0 = arith.constant 0 : i32
    %c0_i32_1 = arith.constant 0 : i32
    %c0_i32_2 = arith.constant 0 : i32
    return %c0_i32, %c0_i32_0, %c0_i32_1 : i32, i32, i32
  }
  func.func @transform_5(%arg0: i32) -> (i32, i32) {
    %c0_i32 = arith.constant 0 : i32
    %c0_i32_0 = arith.constant 0 : i32
    %c0_i32_1 = arith.constant 0 : i32
    return %c0_i32, %c0_i32_0 : i32, i32
  }
  func.func @transform_6(%arg0: i32) -> (i32, i32) {
    %c0_i32 = arith.constant 0 : i32
    %c0_i32_0 = arith.constant 0 : i32
    %c0_i32_1 = arith.constant 0 : i32
    return %c0_i32, %c0_i32_0 : i32, i32
  }
  func.func @transform_7(%arg0: i32) -> (i32, i32) {
    %c0_i32 = arith.constant 0 : i32
    %c0_i32_0 = arith.constant 0 : i32
    %c0_i32_1 = arith.constant 0 : i32
    return %c0_i32, %c0_i32_0 : i32, i32
  }
  func.func @transform_8(%arg0: i32) -> (i32, i32) {
    %c0_i32 = arith.constant 0 : i32
    %c0_i32_0 = arith.constant 0 : i32
    %c0_i32_1 = arith.constant 0 : i32
    return %c0_i32, %c0_i32_0 : i32, i32
  }
  func.func @transform_9(%arg0: i32) -> (i32, i32, i32) {
    %c0_i32 = arith.constant 0 : i32
    %c0_i32_0 = arith.constant 0 : i32
    %c0_i32_1 = arith.constant 0 : i32
    %c0_i32_2 = arith.constant 0 : i32
    return %c0_i32, %c0_i32_0, %c0_i32_1 : i32, i32, i32
  }
}

</mosaic_0001>

<bundles_post_ra>
// kernel: tpu_custom_call.1
= control target key start
LH: loop header
LB: loop body
LE: loop exit
PB: predicated region body
PF: predicated region fallthrough
CT: control target
= control target key end

     0   :  { %14 = vsyncpa [#allocation3], 0  ;;  %s2196_s0 = inlined_call_operand.hbm [shape: f32[2,8,32], index: 0, kind: input, shape index: {}, may-alias: {0,9}]   ;;  %s2197_s1 = inlined_call_operand.hbm [shape: f32[2], index: 1, kind: input, shape index: {}]   ;;  %s2198_s2 = inlined_call_operand.hbm [shape: f32[6,128], index: 2, kind: input, shape index: {}]   ;;  %s2199_s3 = inlined_call_operand.vmem [shape: bf16[32,96], index: 3, kind: input, shape index: {}]   ;;  %s2200_s4 = inlined_call_operand.hbm [shape: bf16[4,8,32], index: 4, kind: input, shape index: {}]   ;;  %s2201_s5 = inlined_call_operand.vmem [shape: bf16[32,256], index: 5, kind: input, shape index: {}]   ;;  %s2202_s6 = inlined_call_operand.hbm [shape: bf16[32,64], index: 6, kind: input, shape index: {}]   ;;  %s2203_s7 = inlined_call_operand.vmem [shape: bf16[64,32], index: 7, kind: input, shape index: {}]   ;;  %s2204_s8 = inlined_call_operand.vmem [shape: bf16[32,256], index: 8, kind: input, shape index: {}]   ;;  %s2205_s9 = inlined_call_operand.hbm [shape: f32[2,8,32], index: 9, kind: output, shape index: {}, may-alias: {0,9}]  }
   0x1   :  { %15 = vsyncpa [#allocation5], 0 }
   0x2   :  { %16 = vsyncpa [#allocation8], 0 }
   0x3   :  { %17 = vsyncpa [#allocation11], 0  ;;  %s46_s11 = sshll.u32 %s2198_s2, 4  ;;  %s47_s11 = int_to_ptr.hbm [resolvable:$true] %s46_s11 }
   0x4   :  { %18 = vsyncpa [#allocation4], 0  ;;  %s1791_s12 = smov [#allocation7]   ;;  %s23_s16 = sshll.u32 %s2196_s0, 4  ;;  %s24_s16 = int_to_ptr.hbm [resolvable:$true] %s23_s16 }
   0x5   :  { %s48_s13 = sshll.u32 %s1791_s12, 4  ;;  %s1792_s17 = smov [#allocation2]   ;;  %s49_s13 = int_to_ptr.vmem [resolvable:$true] %s48_s13 }
   0x6   :  { %51 = dma.hbm_to_vmem [thread:$0]  %s47_s11, 128, %s49_s13, [#allocation8]  }
   0x7   :  { %s25_s18 = sshll.u32 %s1792_s17, 4  ;;  %s1793_s19 = smov 128   ;;  %s26_s18 = int_to_ptr.vmem [resolvable:$true] %s25_s18 }
   0x8   :  { %s1794_s20 = smov 8   ;;  %s37_s22 = sshll.u32 %s2197_s1, 4  ;;  %s38_s22 = int_to_ptr.hbm [resolvable:$true] %s37_s22 }
   0x9   :  { %31 = dma.hbm_to_vmem [thread:$0]  %s24_s16, 256, %s26_s18, [#allocation3], %s1793_s19, %s1793_s19, %s1794_s20  }
   0xa   :  { %s58_s0 = sshll.u32 %s2200_s4, 4  ;;  %s1795_s25 = smov [#allocation6]   ;;  %s59_s0 = int_to_ptr.hbm [resolvable:$true] %s58_s0 }
   0xb   :  { %40 = dma.hbm_to_smem %s38_s22, 16, %s1795_s25, [#allocation5]  }
   0xc   :  { %s1796_s26 = smov [#allocation9]   ;;  %s1797_s28 = smov 64  }
   0xd   :  { %s60_s27 = sshll.u32 %s1796_s26, 4  ;;  %s1798_s29 = smov 4   ;;  %s61_s27 = int_to_ptr.vmem [resolvable:$true] %s60_s27 }
   0xe   :  { %66 = dma.hbm_to_vmem [thread:$0]  %s59_s0, 256, %s61_s27, [#allocation8], %s1797_s28, %s1797_s28, %s1798_s29  }
   0xf   :  { %s73_s1 = sshll.u32 %s2202_s6, 4  ;;  %s1799_s11 = smov [#allocation10]   ;;  %s74_s1 = int_to_ptr.hbm [resolvable:$true] %s73_s1 }
  0x10   :  { %s75_s12 = sshll.u32 %s1799_s11, 4  ;;  %s76_s12 = int_to_ptr.vmem [resolvable:$true] %s75_s12 }
  0x11   :  { %81 = dma.hbm_to_vmem [thread:$0]  %s74_s1, 256, %s76_s12, [#allocation11], %s1797_s28, %s1797_s28, %s1798_s29  }
  0x12   :  { %1781 = dma.done.wait [#allocation3], 256  }
  0x13   :  { %1782 = vsyncadd [#allocation3], 4294967040 }
  0x14   :  { %1783 = dma.done.wait [#allocation5], 16  }
  0x15   :  { %1784 = vsyncadd [#allocation5], 4294967280 }
  0x16   :  { %1785 = dma.done.wait [#allocation8], 384  }
  0x17   :  { %1786 = vsyncadd [#allocation8], 4294966912 }
  0x18   :  { %1787 = dma.done.wait [#allocation11], 256  }
  0x19   :  { %1788 = vsyncadd [#allocation11], 4294967040 }
  0x1a   :  { %106 = sfence }
  0x1b   :  { %v1885_v0 = vld [vmem:[#allocation2] sm:$0xff]  ;;  %vm114_vm0 = vcmask 261120   ;;  %v1889_v2 = vld [vmem:[#allocation2 + $0x8] sm:$0xff]  ;;  %s111_s15 = sld [smem:[#allocation6]]  ;;  %v1904_v32 = vld [vmem:[#allocation7] sm:$0x3f] }
  0x1c   :  { %v112_v1 = vmul.f32 %v1885_v0, %v1885_v0  ;;  %v113_v4 = vmul.f32 %v1889_v2, %v1889_v2  ;;  %v1525_v6 = vld [vmem:[%s2199_s3 + $0x8] sm:$0xff]  ;;  %v1524_v7 = vld [vmem:[%s2199_s3] sm:$0xff]  ;;  %v153_v33 = vperm.slane %v1904_v32, 0  ;;  %s1800_s3 = smov 88   ;;  %s1801_s16 = smov 96   ;;  %vm192_vm7 = vcmask 64512  }
  0x1d   :  { %175 = vmatpush.bf16.msra.mxu0 %v1525_v6  ;;  %s1802_s17 = smov 120   ;;  %s1803_s18 = smov 80   ;;  %vm265_vm8 = vcmask 1043456  }
  0x1e   :  { %v115_v3 = vsel %vm114_vm0, %v112_v1, 0.0  ;;  %v118_v5 = vsel %vm114_vm0, %v113_v4, 0.0  ;;  %s1804_s2 = smov 112   ;;  %s1805_s21 = smov 56  }
  0x1f   :  { %116 = vadd.xlane.f32.xlu0 %v115_v3  ;;  %s1806_s22 = smov 48   ;;  %s1807_s23 = smov 72  }
  0x20   :  { %s1808_s24 = smov 104   ;;  %s1809_s0 = smov 40  }
  0x21   :  { %176 = vmatpush.bf16.msra.mxu0 %v1524_v7  ;;  %v143_v24 = vstv %s111_s15 }
  0x27   :  { %119 = vadd.xlane.f32.xlu0 %v118_v5 }
  0x92   :  { %v117_v8 = vpop.xlane.xlu0 %116 }
  0x93   :  { %v121_v9 = vmax.f32 %v117_v8, 1e-12 }
  0x95   :  { %1562 = vrsqrt.f32 %v121_v9  ;;  %vm129_vm2 = vweird.f32 %v121_v9 }
  0x9a   :  { %v120_v10 = vpop.xlane.xlu0 %119 }
  0x9b   :  { %v1563_v11 = vpop.eup %1562  ;;  %v122_v12 = vmax.f32 %v120_v10, 1e-12 }
  0x9c   :  { %v124_v13 = vmul.f32 %v1563_v11, %v121_v9  ;;  %vm130_vm1 = vweird.f32 %v1563_v11 }
  0x9d   :  { %1564 = vrsqrt.f32 %v122_v12  ;;  %vm131_vm3 = vmor %vm129_vm2, %vm130_vm1  ;;  %vm139_vm5 = vweird.f32 %v122_v12 }
  0x9e   :  { %v125_v14 = vmul.f32 %v1563_v11, %v124_v13 }
  0xa0   :  { %v126_v15 = vmul.f32 0.5, %v125_v14 }
  0xa2   :  { %v127_v16 = vsub.f32 1.5, %v126_v15 }
  0xa3   :  { %v1565_v17 = vpop.eup %1564 }
  0xa4   :  { %v134_v18 = vmul.f32 %v1565_v17, %v122_v12  ;;  %v128_v19 = vmul.f32 %v1563_v11, %v127_v16  ;;  %vm140_vm4 = vweird.f32 %v1565_v17 }
  0xa5   :  { %vm141_vm6 = vmor %vm139_vm5, %vm140_vm4 }
  0xa6   :  { %v135_v20 = vmul.f32 %v1565_v17, %v134_v18  ;;  %v132_v22 = vsel %vm131_vm3, %v1563_v11, %v128_v19 }
  0xa7   :  { %v144_v26 = vmul.f32 %v143_v24, %v132_v22 }
  0xa8   :  { %v136_v21 = vmul.f32 0.5, %v135_v20 }
  0xa9   :  { %v146_v29 = vmul.f32 %v144_v26, %v1885_v0 }
  0xaa   :  { %v137_v23 = vsub.f32 1.5, %v136_v21 }
  0xac   :  { %v138_v25 = vmul.f32 %v1565_v17, %v137_v23 }
  0xae   :  { %v142_v27 = vsel %vm141_vm6, %v1565_v17, %v138_v25 }
  0xaf   :  { %v145_v28 = vmul.f32 %v143_v24, %v142_v27 }
  0xb1   :  { %v147_v30 = vmul.f32 %v145_v28, %v1889_v2 }
  0xb3   :  { %v148_v31 = vpack.c.bf16 %v147_v30, %v146_v29 }
  0xb5   :  { %1428 = vmatmul.msk.bf16.vlgmr.msra.gmra.mxu0 %vm114_vm0, %v148_v31 }
 0x132   :  { %v178_v34 = vpop.f32.mrf.mxu0 }
 0x133   :  { %v179_v35 = vadd.f32 %v178_v34, %v153_v33 }
 0x135   :  { %v185_v36 = vpack.c.bf16 %v179_v35, %v179_v35 }
 0x137   :  { %v188_v37 = vunpack.c.l.b16 %v185_v36 }
 0x139   :  { %v1907_v38 = vpack.c.b16 %v188_v37, %v188_v37 }
 0x13a   :  { %v180_v39 = vpop.f32.mrf.mxu0 }
 0x13b   :  { %v181_v40 = vadd.f32 %v180_v39, %v153_v33  ;;  %329 = vrot.lane.b32.xlu2 %v1907_v38, %s1800_s3  ;;  %190 = vrot.lane.b32.xlu1 %v1907_v38, %s1801_s16 }
 0x13d   :  { %v186_v41 = vpack.c.bf16 %v181_v40, %v181_v40 }
 0x13f   :  { %v213_v42 = vunpack.c.l.b16 %v186_v41 }
 0x141   :  { %v1912_v43 = vpack.c.b16 %v213_v42, %v213_v42 }
 0x143   :  { %352 = vrot.lane.b32.xlu0 %v1912_v43, %s1800_s3  ;;  %327 = vrot.lane.b32.xlu2 %v1907_v38, %s1802_s17 }
 0x144   :  { %215 = vrot.lane.b32.xlu1 %v1912_v43, %s1801_s16 }
 0x14b   :  { %466 = vrot.lane.b32.xlu0 %v1907_v38, %s1803_s18 }
 0x14c   :  { %350 = vrot.lane.b32.xlu1 %v1912_v43, %s1802_s17 }
 0x153   :  { %464 = vrot.lane.b32.xlu0 %v1907_v38, %s1804_s2 }
 0x195   :  { %v330_v44 = vpop.permute.xlu2 %329 }
 0x196   :  { %v335_v47 = vsel %vm192_vm7, %v330_v44, 0 }
 0x19d   :  { %v328_v54 = vpop.permute.xlu2 %327 }
 0x1ad   :  { %v191_v45 = vpop.permute.xlu1 %190 }
 0x1ae   :  { %v197_v46 = vsel %vm192_vm7, %v191_v45, 0 }
 0x1af   :  { %206 = vmatpush.bf16.xpose.msra.mxu1 %v197_v46 }
 0x1b5   :  { %v353_v48 = vpop.permute.xlu0 %352 }
 0x1b6   :  { %v216_v49 = vpop.permute.xlu1 %215  ;;  %1429 = vmatmul.msk.bf16.vlgmr.msra.gmra.mxu1 %vm192_vm7, %v185_v36  ;;  %v358_v50 = vsel %vm192_vm7, %v353_v48, 0 }
 0x1b7   :  { %344 = vmatpush.bf16.xpose.msrb.mxu1 %v335_v47  ;;  %v221_v51 = vsel %vm192_vm7, %v216_v49, 0 }
 0x1b8   :  { %230 = vmatpush.bf16.xpose.msra.mxu2 %v221_v51 }
 0x1bd   :  { %v467_v52 = vpop.permute.xlu0 %466 }
 0x1be   :  { %v472_v53 = vsel %vm192_vm7, %v467_v52, 0  ;;  %v351_v55 = vpop.permute.xlu1 %350 }
 0x1bf   :  { %1430 = vmatmul.msk.bf16.vlgmr.msra.gmra.mxu2 %vm192_vm7, %v186_v41 }
 0x1c0   :  { %367 = vmatpush.bf16.xpose.msrb.mxu2 %v358_v50 }
 0x1c5   :  { %v465_v56 = vpop.permute.xlu0 %464 }
 0x1c6   :  { %1434 = vmatmul.msk.bf16.vlgmr.msrb.gmra.mxu1 %vm192_vm7, %v328_v54 }
 0x1c8   :  { %481 = vmatpush.bf16.xpose.msra.mxu2 %v472_v53 }
 0x1cf   :  { %1435 = vmatmul.msk.bf16.vlgmr.msrb.gmra.mxu2 %vm192_vm7, %v351_v55 }
 0x1df   :  { %1439 = vmatmul.msk.bf16.vlgmr.msra.gmra.mxu2 %vm192_vm7, %v465_v56 }
 0x233   :  { %v208_v57 = vpop.f32.mrf.mxu1 }
 0x234   :  { %v236_v58 = vsel %vm192_vm7, %v208_v57, -inf }
 0x235   :  { %237 = vmax.xlane.f32.xlu2 %v236_v58 }
 0x23b   :  { %v210_v59 = vpop.f32.mrf.mxu1 }
 0x23c   :  { %v304_v59 = vld [vmem:[#allocation9] sm:$0xf] }
 0x242   :  { %v232_v60 = vpop.f32.mrf.mxu2 }
 0x243   :  { %v346_v61 = vpop.f32.mrf.mxu1  ;;  %v239_v62 = vsel %vm192_vm7, %v232_v60, -inf }
 0x244   :  { %240 = vmax.xlane.f32.xlu1 %v239_v62  ;;  %v373_v63 = vsel %vm192_vm7, %v346_v61, -inf }
 0x245   :  { %374 = vmax.xlane.f32.xlu2 %v373_v63 }
 0x24a   :  { %v234_v1 = vpop.f32.mrf.mxu2 }
 0x24b   :  { %v348_v3 = vpop.f32.mrf.mxu1 }
 0x252   :  { %v1936_v4 = vpop.f32.mrf.mxu2 }
 0x253   :  { %v376_v25 = vsel %vm192_vm7, %v1936_v4, -inf }
 0x25a   :  { %v371_v5 = vpop.f32.mrf.mxu2 }
 0x25d   :  { %260 = vrot.lane.b32.xlu2 %v1907_v38, %s1797_s28 }
 0x262   :  { %v1940_v6 = vpop.f32.mrf.mxu2 }
 0x263   :  { %v510_v26 = vsel %vm192_vm7, %v1940_v6, -inf }
 0x26a   :  { %v485_v7 = vpop.f32.mrf.mxu2 }
 0x2a8   :  { %v238_v8 = vpop.xlane.xlu2 %237 }
 0x2a9   :  { %v242_v9 = vsub.f32 %v208_v57, %v238_v8 }
 0x2ab   :  { %v244_v10 = vmul.f32 1.442695, %v242_v9 }
 0x2ad   :  { %1566 = vpow2.f32 %v244_v10  ;;  %v441_v10 = vld [vmem:[#allocation9 + $0x4] sm:$0xf] }
 0x2b3   :  { %v1567_v11 = vpop.eup %1566 }
 0x2b4   :  { %v248_v12 = vsel %vm192_vm7, %v1567_v11, 0.0 }
 0x2b5   :  { %249 = vadd.xlane.f32.xlu0 %v248_v12 }
 0x2b7   :  { %v241_v13 = vpop.xlane.xlu1 %240 }
 0x2b8   :  { %v243_v14 = vsub.f32 %v232_v60, %v241_v13  ;;  %v375_v15 = vpop.xlane.xlu2 %374  ;;  %v309_v60 = vsel %vm265_vm8, %v304_v59, 0  ;;  %v446_v13 = vsel %vm265_vm8, %v441_v10, 0 }
 0x2b9   :  { %v379_v16 = vsub.f32 %v346_v61, %v375_v15  ;;  %318 = vmatpush.bf16.msrb.mxu0 %v309_v60  ;;  %455 = vmatpush.bf16.msra.mxu1 %v446_v13 }
 0x2ba   :  { %v246_v17 = vmul.f32 1.442695, %v243_v14 }
 0x2bb   :  { %v381_v18 = vmul.f32 1.442695, %v379_v16 }
 0x2bc   :  { %1568 = vpow2.f32 %v246_v17 }
 0x2bd   :  { %1570 = vpow2.f32 %v381_v18 }
 0x2c0   :  { %v261_v19 = vpop.permute.xlu2 %260 }
 0x2c1   :  { %v267_v20 = vsel %vm265_vm8, %v261_v19, 0 }
 0x2c2   :  { %v1569_v21 = vpop.eup %1568  ;;  %276 = vmatpush.bf16.msra.mxu3 %v267_v20 }
 0x2c3   :  { %v1571_v22 = vpop.eup %1570  ;;  %v251_v23 = vsel %vm192_vm7, %v1569_v21, 0.0 }
 0x2c4   :  { %252 = vadd.xlane.f32.xlu1 %v251_v23  ;;  %v385_v24 = vsel %vm192_vm7, %v1571_v22, 0.0 }
 0x2c5   :  { %386 = vadd.xlane.f32.xlu2 %v385_v24 }
 0x2c9   :  { %397 = vrot.lane.b32.xlu0 %v1907_v38, %s1805_s21 }
 0x2dd   :  { %282 = vrot.lane.b32.xlu1 %v1912_v43, %s1797_s28 }
 0x2e5   :  { %489 = vrot.lane.b32.xlu1 %v1912_v43, %s1803_s18  ;;  %s1810_s18 = smov 32  }
 0x2ed   :  { %487 = vrot.lane.b32.xlu1 %v1912_v43, %s1804_s2 }
 0x2f3   :  { %377 = vmax.xlane.f32.xlu0 %v376_v25 }
 0x317   :  { %511 = vmax.xlane.f32.xlu1 %v510_v26 }
 0x328   :  { %v250_v27 = vpop.xlane.xlu0 %249 }
 0x329   :  { %1572 = vrcp.f32 %v250_v27 }
 0x32f   :  { %v1573_v28 = vpop.eup %1572 }
 0x330   :  { %534 = vrot.lane.b32.xlu1 %v1907_v38, %s1806_s22  ;;  %v256_v29 = vmul.f32 %v1573_v28, %v1567_v11 }
 0x332   :  { %v258_v30 = vpack.c.bf16 %v256_v29, %v256_v29 }
 0x334   :  { %1431 = vmatmul.msk.bf16.vlgmr.msra.gmra.mxu3 %vm192_vm7, %v258_v30 }
 0x337   :  { %v253_v31 = vpop.xlane.xlu1 %252 }
 0x338   :  { %1574 = vrcp.f32 %v253_v31  ;;  %v387_v40 = vpop.xlane.xlu2 %386 }
 0x339   :  { %1576 = vrcp.f32 %v387_v40 }
 0x33b   :  { %v398_v35 = vpop.permute.xlu0 %397 }
 0x33c   :  { %v403_v39 = vsel %vm265_vm8, %v398_v35, 0 }
 0x33e   :  { %v1575_v33 = vpop.eup %1574 }
 0x33f   :  { %v257_v34 = vmul.f32 %v1575_v33, %v1569_v21  ;;  %v1577_v45 = vpop.eup %1576 }
 0x340   :  { %v393_v46 = vmul.f32 %v1577_v45, %v1571_v22 }
 0x341   :  { %v259_v41 = vpack.c.bf16 %v257_v34, %v257_v34 }
 0x342   :  { %v395_v47 = vpack.c.bf16 %v393_v46, %v393_v46 }
 0x34f   :  { %v283_v36 = vpop.permute.xlu1 %282 }
 0x350   :  { %v288_v37 = vsel %vm265_vm8, %v283_v36, 0 }
 0x351   :  { %297 = vmatpush.bf16.msrb.mxu3 %v288_v37 }
 0x354   :  { %1432 = vmatmul.msk.bf16.vlgmr.msrb.gmra.mxu3 %vm192_vm7, %v259_v41 }
 0x355   :  { %412 = vmatpush.bf16.msra.mxu3 %v403_v39 }
 0x357   :  { %v490_v42 = vpop.permute.xlu1 %489 }
 0x358   :  { %v495_v44 = vsel %vm192_vm7, %v490_v42, 0 }
 0x359   :  { %504 = vmatpush.bf16.xpose.msrb.mxu3 %v495_v44 }
 0x35f   :  { %v488_v53 = vpop.permute.xlu1 %487 }
 0x364   :  { %1436 = vmatmul.msk.bf16.vlgmr.msra.gmra.mxu3 %vm192_vm7, %v395_v47 }
 0x366   :  { %v378_v48 = vpop.xlane.xlu0 %377 }
 0x367   :  { %v380_v49 = vsub.f32 %v1936_v4, %v378_v48 }
 0x369   :  { %v383_v50 = vmul.f32 1.442695, %v380_v49 }
 0x36b   :  { %1578 = vpow2.f32 %v383_v50 }
 0x371   :  { %v1579_v51 = vpop.eup %1578 }
 0x372   :  { %v388_v52 = vsel %vm192_vm7, %v1579_v51, 0.0 }
 0x373   :  { %389 = vadd.xlane.f32.xlu2 %v388_v52  ;;  %v183_v52 = vperm.slane %v1904_v32, 1 }
 0x374   :  { %1440 = vmatmul.msk.bf16.vlgmr.msrb.gmra.mxu3 %vm192_vm7, %v488_v53 }
 0x38a   :  { %v512_v54 = vpop.xlane.xlu1 %511 }
 0x38b   :  { %v516_v55 = vsub.f32 %v1940_v6, %v512_v54  ;;  %418 = vrot.lane.b32.xlu2 %v1912_v43, %s1805_s21  ;;  %s1404_s21 = sshll.u32 %s2205_s9, 4  ;;  %s1405_s21 = int_to_ptr.hbm [resolvable:$true] %s1404_s21 }
 0x38d   :  { %v518_v56 = vmul.f32 1.442695, %v516_v55 }
 0x38f   :  { %1580 = vpow2.f32 %v518_v56 }
 0x393   :  { %603 = vrot.lane.b32.xlu2 %v1907_v38, %s1807_s23 }
 0x395   :  { %v1581_v57 = vpop.eup %1580 }
 0x396   :  { %v522_v58 = vsel %vm192_vm7, %v1581_v57, 0.0 }
 0x397   :  { %523 = vadd.xlane.f32.xlu0 %v522_v58 }
 0x39b   :  { %601 = vrot.lane.b32.xlu2 %v1907_v38, %s1808_s24 }
 0x3a2   :  { %v535_v7 = vpop.permute.xlu1 %534 }
 0x3a3   :  { %624 = vrot.lane.b32.xlu2 %v1912_v43, %s1808_s24  ;;  %v540_v14 = vsel %vm265_vm8, %v535_v7, 0 }
 0x3ab   :  { %626 = vrot.lane.b32.xlu0 %v1912_v43, %s1807_s23  ;;  %555 = vrot.lane.b32.xlu2 %v1912_v43, %s1806_s22  ;;  %s1472_s23 = sld [smem:[#allocation6 + $0x1]] }
 0x3b7   :  { %v278_v61 = vpop.f32.mrf.mxu3 }
 0x3bf   :  { %v280_v62 = vpop.f32.mrf.mxu3 }
 0x3d7   :  { %v299_v63 = vpop.f32.mrf.mxu3 }
 0x3d8   :  { %v303_v1 = vpack.c.bf16 %v299_v63, %v278_v61 }
 0x3da   :  { %1433 = vmatmul.msk.bf16.vlgmr.msrb.gmra.mxu0 %vm192_vm7, %v303_v1 }
 0x3df   :  { %v301_v3 = vpop.f32.mrf.mxu3 }
 0x3e6   :  { %v390_v4 = vpop.xlane.xlu2 %389 }
 0x3e7   :  { %1582 = vrcp.f32 %v390_v4  ;;  %v414_v5 = vpop.f32.mrf.mxu3 }
 0x3ed   :  { %v1583_v6 = vpop.eup %1582 }
 0x3ee   :  { %v394_v8 = vmul.f32 %v1583_v6, %v1579_v51  ;;  %v419_v9 = vpop.permute.xlu2 %418 }
 0x3ef   :  { %v424_v11 = vsel %vm265_vm8, %v419_v9, 0  ;;  %v416_v12 = vpop.f32.mrf.mxu3  ;;  %v578_v9 = vld [vmem:[#allocation9 + $0x8] sm:$0xf] }
 0x3f0   :  { %v396_v15 = vpack.c.bf16 %v394_v8, %v394_v8  ;;  %433 = vmatpush.bf16.msra.mxu0 %v424_v11  ;;  %v583_v10 = vsel %vm265_vm8, %v578_v9, 0 }
 0x3f1   :  { %592 = vmatpush.bf16.msrb.mxu2 %v583_v10 }
 0x3f3   :  { %1437 = vmatmul.msk.bf16.vlgmr.msra.gmra.mxu0 %vm192_vm7, %v396_v15 }
 0x3f4   :  { %549 = vmatpush.bf16.msrb.mxu0 %v540_v14 }
 0x3f6   :  { %v604_v16 = vpop.permute.xlu2 %603 }
 0x3f7   :  { %v609_v17 = vsel %vm192_vm7, %v604_v16, 0  ;;  %v506_v18 = vpop.f32.mrf.mxu3 }
 0x3f8   :  { %618 = vmatpush.bf16.xpose.msra.mxu3 %v609_v17  ;;  %v513_v19 = vsel %vm192_vm7, %v506_v18, -inf }
 0x3f9   :  { %514 = vmax.xlane.f32.xlu1 %v513_v19 }
 0x3fe   :  { %v602_v20 = vpop.permute.xlu2 %601 }
 0x3ff   :  { %v508_v21 = vpop.f32.mrf.mxu3  ;;  %1444 = vmatmul.msk.bf16.vlgmr.msra.gmra.mxu3 %vm192_vm7, %v602_v20 }
 0x406   :  { %v625_v22 = vpop.permute.xlu2 %624 }
 0x40a   :  { %v524_v23 = vpop.xlane.xlu0 %523 }
 0x40b   :  { %1584 = vrcp.f32 %v524_v23 }
 0x40e   :  { %v556_v24 = vpop.permute.xlu2 %555 }
 0x40f   :  { %v561_v25 = vsel %vm265_vm8, %v556_v24, 0 }
 0x410   :  { %570 = vmatpush.bf16.msrb.mxu1 %v561_v25 }
 0x411   :  { %v1585_v26 = vpop.eup %1584 }
 0x412   :  { %v530_v27 = vmul.f32 %v1585_v26, %v1581_v57 }
 0x414   :  { %v532_v28 = vpack.c.bf16 %v530_v27, %v530_v27 }
 0x416   :  { %1441 = vmatmul.msk.bf16.vlgmr.msrb.gmra.mxu0 %vm192_vm7, %v532_v28 }
 0x41d   :  { %v627_v29 = vpop.permute.xlu0 %626 }
 0x41e   :  { %v632_v30 = vsel %vm192_vm7, %v627_v29, 0 }
 0x41f   :  { %641 = vmatpush.bf16.xpose.msra.mxu0 %v632_v30 }
 0x426   :  { %1445 = vmatmul.msk.bf16.vlgmr.msra.gmra.mxu0 %vm192_vm7, %v625_v22 }
 0x457   :  { %v320_v31 = vpop.f32.mrf.mxu0 }
 0x458   :  { %v325_v54 = vadd.f32 %v320_v31, %v183_v52 }
 0x45f   :  { %v1992_v33 = vpop.f32.mrf.mxu0 }
 0x460   :  { %v326_v26 = vadd.f32 %v1992_v33, %v183_v52  ;;  %v1462_v33 = vld [vmem:[%s2201_s5 + $0x18] sm:$0xf0] }
 0x46c   :  { %v515_v34 = vpop.xlane.xlu1 %514 }
 0x46d   :  { %v517_v35 = vsub.f32 %v506_v18, %v515_v34  ;;  %v715_v34 = vld [vmem:[#allocation9 + $0xc] sm:$0xf] }
 0x46f   :  { %v520_v36 = vmul.f32 1.442695, %v517_v35  ;;  %v720_v35 = vsel %vm265_vm8, %v715_v34, 0 }
 0x470   :  { %v435_v37 = vpop.f32.mrf.mxu0  ;;  %729 = vmatpush.bf16.msrb.mxu3 %v720_v35 }
 0x471   :  { %1586 = vpow2.f32 %v520_v36  ;;  %v439_v39 = vpack.c.bf16 %v435_v37, %v414_v5 }
 0x473   :  { %1438 = vmatmul.msk.bf16.vlgmr.msra.gmra.mxu1 %vm192_vm7, %v439_v39 }
 0x477   :  { %v1587_v40 = vpop.eup %1586 }
 0x478   :  { %v437_v41 = vpop.f32.mrf.mxu0  ;;  %v525_v42 = vsel %vm192_vm7, %v1587_v40, 0.0 }
 0x479   :  { %526 = vadd.xlane.f32.xlu0 %v525_v42  ;;  %v1526_v42 = vld [vmem:[%s2201_s5 + $0x4] sm:$0xf] }
 0x482   :  { %v620_v44 = vpop.f32.mrf.mxu3 }
 0x483   :  { %v647_v45 = vsel %vm192_vm7, %v620_v44, -inf }
 0x484   :  { %648 = vmax.xlane.f32.xlu1 %v647_v45 }
 0x48a   :  { %v622_v46 = vpop.f32.mrf.mxu3 }
 0x48b   :  { %v1455_v46 = vld [vmem:[%s2201_s5 + $0x10] sm:$0xf] }
 0x493   :  { %v551_v47 = vpop.f32.mrf.mxu0 }
 0x49b   :  { %v553_v48 = vpop.f32.mrf.mxu0 }
 0x4a3   :  { %v643_v49 = vpop.f32.mrf.mxu0 }
 0x4a4   :  { %v650_v50 = vsel %vm192_vm7, %v643_v49, -inf }
 0x4a5   :  { %651 = vmax.xlane.f32.xlu2 %v650_v50  ;;  %v1451_v50 = vld [vmem:[%s2201_s5] sm:$0xf] }
 0x4ab   :  { %v645_v51 = vpop.f32.mrf.mxu0 }
 0x4ac   :  { %v1527_v51 = vld [vmem:[%s2201_s5 + $0x4] sm:$0xf0] }
 0x4ad   :  { %v1452_v52 = vor.u32 %v1527_v51, %v1451_v50 }
 0x4bd   :  { %671 = vrot.lane.b32.xlu2 %v1907_v38, %s1809_s0 }
 0x4ec   :  { %v527_v53 = vpop.xlane.xlu0 %526 }
 0x4ed   :  { %1588 = vrcp.f32 %v527_v53  ;;  %v838_v53 = vperm.slane %v1904_v32, 2 }
 0x4f0   :  { %v457_v55 = vpop.f32.mrf.mxu1 }
 0x4f1   :  { %v462_v56 = vadd.f32 %v457_v55, %v325_v54 }
 0x4f3   :  { %v1589_v57 = vpop.eup %1588 }
 0x4f4   :  { %v531_v58 = vmul.f32 %v1589_v57, %v1587_v40  ;;  %v1528_v40 = vld [vmem:[%s2201_s5 + $0x14] sm:$0xf] }
 0x4f5   :  { %v1465_v41 = vor.u32 %v1528_v40, %v1462_v33 }
 0x4f6   :  { %v533_v59 = vpack.c.bf16 %v531_v58, %v531_v58 }
 0x4f7   :  { %v649_v60 = vpop.xlane.xlu1 %648 }
 0x4f8   :  { %1442 = vmatmul.msk.bf16.vlgmr.msrb.gmra.mxu1 %vm192_vm7, %v533_v59  ;;  %v653_v61 = vsub.f32 %v620_v44, %v649_v60  ;;  %v459_v11 = vpop.f32.mrf.mxu1  ;;  %v1458_v44 = vld [vmem:[%s2201_s5 + $0x8] sm:$0xf0] }
 0x4f9   :  { %v463_v28 = vadd.f32 %v459_v11, %v326_v26  ;;  %v1461_v45 = vor.u32 %v1526_v42, %v1458_v44 }
 0x4fa   :  { %v655_v62 = vmul.f32 1.442695, %v653_v61 }
 0x4fc   :  { %1590 = vpow2.f32 %v655_v62 }
 0x502   :  { %v1591_v63 = vpop.eup %1590 }
 0x503   :  { %v659_v1 = vsel %vm192_vm7, %v1591_v63, 0.0 }
 0x504   :  { %660 = vadd.xlane.f32.xlu1 %v659_v1 }
 0x518   :  { %v652_v38 = vpop.xlane.xlu2 %651 }
 0x519   :  { %v654_v3 = vsub.f32 %v643_v49, %v652_v38  ;;  %v743_v49 = vpack.c.bf16 %v1889_v2, %v1885_v0 }
 0x51b   :  { %v657_v4 = vmul.f32 1.442695, %v654_v3 }
 0x51d   :  { %1592 = vpow2.f32 %v657_v4  ;;  %890 = vrot.lane.b32.xlu1 %v1465_v41, %s1797_s28 }
 0x520   :  { %v672_v5 = vpop.permute.xlu2 %671 }
 0x521   :  { %v677_v6 = vsel %vm265_vm8, %v672_v5, 0 }
 0x522   :  { %686 = vmatpush.bf16.msra.mxu1 %v677_v6 }
 0x523   :  { %v1593_v7 = vpop.eup %1592 }
 0x524   :  { %v662_v8 = vsel %vm192_vm7, %v1593_v7, 0.0 }
 0x525   :  { %663 = vadd.xlane.f32.xlu0 %v662_v8  ;;  %840 = vrot.lane.b32.xlu1 %v838_v53, %s1810_s18 }
 0x526   :  { %790 = vmatpush.bf16.msrb.mxu1 %v1465_v41 }
 0x52a   :  { %791 = vmatpush.bf16.msrb.mxu1 %v1461_v45 }
 0x539   :  { %692 = vrot.lane.b32.xlu0 %v1912_v43, %s1809_s0 }
 0x541   :  { %888 = vrot.lane.b32.xlu0 %v1461_v45, %s1797_s28 }
 0x575   :  { %v572_v12 = vpop.f32.mrf.mxu1 }
 0x576   :  { %v576_v13 = vpack.c.bf16 %v572_v12, %v551_v47  ;;  %v1529_v47 = vld [vmem:[%s2201_s5 + $0x14] sm:$0xf0] }
 0x577   :  { %v661_v14 = vpop.xlane.xlu1 %660  ;;  %v1456_v48 = vor.u32 %v1529_v47, %v1455_v46 }
 0x578   :  { %1443 = vmatmul.msk.bf16.vlgmr.msrb.gmra.mxu2 %vm192_vm7, %v576_v13  ;;  %1594 = vrcp.f32 %v661_v14 }
 0x579   :  { %765 = vmatpush.bf16.msrb.mxu0 %v1456_v48 }
 0x57d   :  { %v574_v15 = vpop.f32.mrf.mxu1  ;;  %766 = vmatpush.bf16.msrb.mxu0 %v1452_v52 }
 0x57e   :  { %v1595_v16 = vpop.eup %1594 }
 0x57f   :  { %v667_v17 = vmul.f32 %v1595_v16, %v1591_v63 }
 0x581   :  { %v669_v18 = vpack.c.bf16 %v667_v17, %v667_v17 }
 0x583   :  { %1446 = vmatmul.msk.bf16.vlgmr.msra.gmra.mxu1 %vm192_vm7, %v669_v18 }
 0x58f   :  { %v891_v59 = vpop.permute.xlu1 %890 }
 0x593   :  { %1466 = vmatmul.msk.bf16.vlgmr.msrb.gmra.mxu1 %vm114_vm0, %v743_v49 }
 0x598   :  { %v664_v19 = vpop.xlane.xlu0 %663 }
 0x599   :  { %1596 = vrcp.f32 %v664_v19 }
 0x59f   :  { %v1597_v43 = vpop.eup %1596 }
 0x5a0   :  { %v668_v20 = vmul.f32 %v1597_v43, %v1593_v7 }
 0x5a2   :  { %v670_v23 = vpack.c.bf16 %v668_v20, %v668_v20 }
 0x5ab   :  { %v693_v21 = vpop.permute.xlu0 %692 }
 0x5ac   :  { %v698_v22 = vsel %vm265_vm8, %v693_v21, 0 }
 0x5ad   :  { %707 = vmatpush.bf16.msra.mxu2 %v698_v22 }
 0x5b0   :  { %1447 = vmatmul.msk.bf16.vlgmr.msra.gmra.mxu2 %vm192_vm7, %v670_v23 }
 0x5b1   :  { %903 = vmatpush.bf16.msrb.mxu2 %v891_v59 }
 0x5b3   :  { %v889_v63 = vpop.permute.xlu0 %888 }
 0x5b5   :  { %904 = vmatpush.bf16.msrb.mxu2 %v889_v63 }
 0x5fb   :  { %v594_v24 = vpop.f32.mrf.mxu2 }
 0x5fc   :  { %v599_v25 = vadd.f32 %v594_v24, %v462_v56 }
 0x600   :  { %v688_v27 = vpop.f32.mrf.mxu1 }
 0x603   :  { %v596_v29 = vpop.f32.mrf.mxu2 }
 0x604   :  { %v600_v30 = vadd.f32 %v596_v29, %v463_v28 }
 0x608   :  { %v690_v31 = vpop.f32.mrf.mxu1 }
 0x610   :  { %v2045_v60 = vpop.f32.mrf.mxu1 }
 0x618   :  { %v2053_v38 = vpop.f32.mrf.mxu1 }
 0x633   :  { %v709_v36 = vpop.f32.mrf.mxu2 }
 0x634   :  { %v713_v37 = vpack.c.bf16 %v709_v36, %v688_v27 }
 0x636   :  { %1448 = vmatmul.msk.bf16.vlgmr.msrb.gmra.mxu3 %vm192_vm7, %v713_v37 }
 0x63b   :  { %v711_v39 = vpop.f32.mrf.mxu2 }
 0x6b9   :  { %v731_v54 = vpop.f32.mrf.mxu3 }
 0x6ba   :  { %v736_v56 = vadd.f32 %v731_v54, %v599_v25 }
 0x6c1   :  { %v733_v55 = vpop.f32.mrf.mxu3 }
 0x6c2   :  { %v737_v57 = vadd.f32 %v733_v55, %v600_v30 }
 0x6c4   :  { %v742_v58 = vpack.c.bf16 %v737_v57, %v736_v56 }
 0x6c6   :  { %1457 = vmatmul.msk.bf16.vlgmr.msrb.gmra.mxu0 %vm114_vm0, %v742_v58 }
 0x743   :  { %v2047_v61 = vpop.f32.mrf.mxu0 }
 0x744   :  { %v798_v62 = vadd.f32 %v2045_v60, %v2047_v61 }
 0x746   :  { %v1467_v32 = vmul.f32 -1.442695, %v798_v62 }
 0x748   :  { %1598 = vpow2.f32 %v1467_v32 }
 0x74b   :  { %v2051_v1 = vpop.f32.mrf.mxu0 }
 0x74c   :  { %v799_v3 = vadd.f32 %v2053_v38, %v2051_v1 }
 0x74e   :  { %v1599_v4 = vpop.eup %1598  ;;  %v1468_v5 = vmul.f32 -1.442695, %v799_v3 }
 0x74f   :  { %v806_v6 = vadd.f32 1.0, %v1599_v4 }
 0x750   :  { %1600 = vpow2.f32 %v1468_v5 }
 0x751   :  { %1602 = vrcp.f32 %v806_v6  ;;  %v819_v16 = vand.u32 2147483648, %v806_v6  ;;  %vm813_vm10 = vweird.f32 %v806_v6  ;;  %v817_v17 = vand.u32 2147483647, %v806_v6 }
 0x753   :  { %v820_v22 = vor.u32 1.1754944e-38, %v819_v16  ;;  %vm818_vm14 = vcmp.eq.f32.partialorder %v817_v17, 8.507059e+37 }
 0x756   :  { %v1601_v7 = vpop.eup %1600 }
 0x757   :  { %v1603_v8 = vpop.eup %1602  ;;  %v807_v9 = vadd.f32 1.0, %v1601_v7 }
 0x758   :  { %v809_v10 = vmul.f32 %v1603_v8, %v806_v6  ;;  %vm814_vm9 = vweird.f32 %v1603_v8 }
 0x759   :  { %1604 = vrcp.f32 %v807_v9  ;;  %vm815_vm11 = vmor %vm813_vm10, %vm814_vm9  ;;  %v834_v19 = vand.u32 2147483648, %v807_v9  ;;  %v832_v20 = vand.u32 2147483647, %v807_v9  ;;  %vm828_vm13 = vweird.f32 %v807_v9 }
 0x75a   :  { %v810_v11 = vsub.f32 1.0, %v809_v10 }
 0x75b   :  { %v835_v24 = vor.u32 1.1754944e-38, %v834_v19  ;;  %vm833_vm1 = vcmp.eq.f32.partialorder %v832_v20, 8.507059e+37 }
 0x75c   :  { %v811_v12 = vmul.f32 %v1603_v8, %v810_v11 }
 0x75e   :  { %v812_v14 = vadd.f32 %v1603_v8, %v811_v12 }
 0x75f   :  { %v1605_v13 = vpop.eup %1604 }
 0x760   :  { %v824_v15 = vmul.f32 %v1605_v13, %v807_v9  ;;  %vm829_vm12 = vweird.f32 %v1605_v13  ;;  %v816_v21 = vsel %vm815_vm11, %v1603_v8, %v812_v14 }
 0x761   :  { %vm830_vm15 = vmor %vm828_vm13, %vm829_vm12  ;;  %v821_v25 = vsel %vm818_vm14, %v820_v22, %v816_v21 }
 0x762   :  { %v825_v18 = vsub.f32 1.0, %v824_v15  ;;  %v885_v28 = vmul.f32 %v821_v25, %v1885_v0 }
 0x764   :  { %v826_v43 = vmul.f32 %v1605_v13, %v825_v18 }
 0x766   :  { %v827_v23 = vadd.f32 %v1605_v13, %v826_v43 }
 0x768   :  { %v831_v26 = vsel %vm830_vm15, %v1605_v13, %v827_v23 }
 0x769   :  { %v836_v27 = vsel %vm833_vm1, %v835_v24, %v831_v26 }
 0x76a   :  { %v886_v29 = vmul.f32 %v836_v27, %v1889_v2 }
 0x76c   :  { %v887_v30 = vpack.c.bf16 %v886_v29, %v885_v28 }
 0x76e   :  { %1471 = vmatmul.msk.bf16.vlgmr.msrb.gmra.mxu2 %vm114_vm0, %v887_v30  ;;  %v1538_v30 = vld [vmem:[%s2204_s8 + $0x14] sm:$0xf] }
 0x7f1   :  { %v906_v31 = vpop.f32.mrf.mxu2 }
 0x7f2   :  { %913 = vrot.lane.b32.xlu2 %v906_v31, %s1797_s28  ;;  %v1514_v31 = vld [vmem:[%s2204_s8 + $0x18] sm:$0xf0] }
 0x7f9   :  { %v908_v34 = vpop.f32.mrf.mxu2 }
 0x7fa   :  { %927 = vrot.lane.b32.xlu2 %v1885_v0, %s1810_s18  ;;  %915 = vrot.lane.b32.xlu0 %v908_v34, %s1797_s28  ;;  %v841_v0 = vpop.permute.xlu1 %840 }
 0x7fb   :  { %v843_v41 = vadd.f32 %v841_v0, %v2047_v61  ;;  %v844_v44 = vadd.f32 %v841_v0, %v2051_v1 }
 0x7fd   :  { %v845_v42 = vadd.f32 %v843_v41, %v2045_v60  ;;  %v846_v45 = vadd.f32 %v844_v44, %v2053_v38  ;;  %v986_v44 = vstv %s1472_s23 }
 0x7ff   :  { %v1470_v46 = vmul.f32 -1.442695, %v846_v45 }
 0x802   :  { %929 = vrot.lane.b32.xlu0 %v1889_v2, %s1810_s18  ;;  %v1469_v2 = vmul.f32 -1.442695, %v845_v42 }
 0x84c   :  { %v914_v35 = vpop.permute.xlu2 %913 }
 0x84d   :  { %v919_v36 = vadd.f32 %v914_v35, %v2047_v61  ;;  %v1517_v35 = vor.u32 %v1538_v30, %v1514_v31 }
 0x84f   :  { %1606 = vtanh.f32 %v919_v36  ;;  %1231 = vmatpush.bf16.msra.mxu2 %v1517_v35 }
 0x854   :  { %v928_v38 = vpop.permute.xlu2 %927 }
 0x855   :  { %v1607_v37 = vpop.eup %1606 }
 0x856   :  { %937 = vrot.lane.b32.xlu1 %v1607_v37, %s1801_s16 }
 0x86c   :  { %v916_v39 = vpop.permute.xlu0 %915 }
 0x86d   :  { %v920_v40 = vadd.f32 %v916_v39, %v2051_v1 }
 0x86f   :  { %1608 = vtanh.f32 %v920_v40 }
 0x870   :  { %1610 = vpow2.f32 %v1469_v2 }
 0x871   :  { %1612 = vpow2.f32 %v1470_v46 }
 0x874   :  { %v930_v14 = vpop.permute.xlu0 %929 }
 0x875   :  { %v1609_v33 = vpop.eup %1608 }
 0x876   :  { %939 = vrot.lane.b32.xlu2 %v1609_v33, %s1801_s16  ;;  %v1611_v47 = vpop.eup %1610 }
 0x877   :  { %v853_v48 = vadd.f32 1.0, %v1611_v47  ;;  %v1613_v49 = vpop.eup %1612 }
 0x878   :  { %v854_v50 = vadd.f32 1.0, %v1613_v49 }
 0x879   :  { %1614 = vrcp.f32 %v853_v48  ;;  %v866_v59 = vand.u32 2147483648, %v853_v48  ;;  %vm860_vm3 = vweird.f32 %v853_v48  ;;  %v864_v60 = vand.u32 2147483647, %v853_v48 }
 0x87a   :  { %1616 = vrcp.f32 %v854_v50  ;;  %v881_v3 = vand.u32 2147483648, %v854_v50  ;;  %vm875_vm7 = vweird.f32 %v854_v50  ;;  %v879_v5 = vand.u32 2147483647, %v854_v50 }
 0x87b   :  { %v867_v32 = vor.u32 1.1754944e-38, %v866_v59  ;;  %vm865_vm5 = vcmp.eq.f32.partialorder %v864_v60, 8.507059e+37 }
 0x87c   :  { %v882_v10 = vor.u32 1.1754944e-38, %v881_v3  ;;  %vm880_vm9 = vcmp.eq.f32.partialorder %v879_v5, 8.507059e+37  ;;  %v2112_v3 = vld [vmem:[#allocation7] sm:$0x3f] }
 0x87f   :  { %v1615_v51 = vpop.eup %1614 }
 0x880   :  { %v856_v52 = vmul.f32 %v1615_v51, %v853_v48  ;;  %v1617_v54 = vpop.eup %1616  ;;  %vm861_vm2 = vweird.f32 %v1615_v51 }
 0x881   :  { %v871_v56 = vmul.f32 %v1617_v54, %v854_v50  ;;  %vm862_vm4 = vmor %vm860_vm3, %vm861_vm2  ;;  %vm876_vm6 = vweird.f32 %v1617_v54 }
 0x882   :  { %v857_v53 = vsub.f32 1.0, %v856_v52  ;;  %vm877_vm8 = vmor %vm875_vm7, %vm876_vm6  ;;  %v1531_v52 = vld [vmem:[#allocation10 + $0x8] sm:$0xff] }
 0x883   :  { %v872_v58 = vsub.f32 1.0, %v871_v56  ;;  %1021 = vmatpush.bf16.msra.mxu3 %v1531_v52  ;;  %v1510_v56 = vld [vmem:[%s2204_s8 + $0x8] sm:$0xf0] }
 0x884   :  { %v858_v55 = vmul.f32 %v1615_v51, %v857_v53  ;;  %v1530_v53 = vld [vmem:[#allocation10] sm:$0xff] }
 0x885   :  { %v873_v62 = vmul.f32 %v1617_v54, %v872_v58 }
 0x886   :  { %v859_v57 = vadd.f32 %v1615_v51, %v858_v55  ;;  %v1536_v55 = vld [vmem:[%s2204_s8 + $0x4] sm:$0xf] }
 0x887   :  { %v874_v1 = vadd.f32 %v1617_v54, %v873_v62  ;;  %1022 = vmatpush.bf16.msra.mxu3 %v1530_v53 }
 0x888   :  { %v863_v61 = vsel %vm862_vm4, %v1615_v51, %v859_v57  ;;  %v1513_v57 = vor.u32 %v1536_v55, %v1510_v56 }
 0x889   :  { %v868_v63 = vsel %vm865_vm5, %v867_v32, %v863_v61  ;;  %v878_v8 = vsel %vm877_vm8, %v1617_v54, %v874_v1  ;;  %v1811_v61 = vmov 1.4142135  }
 0x88a   :  { %v923_v4 = vsub.f32 1.0, %v868_v63  ;;  %v883_v12 = vsel %vm880_vm9, %v882_v10, %v878_v8  ;;  %1232 = vmatpush.bf16.msra.mxu2 %v1513_v57 }
 0x88b   :  { %v924_v15 = vsub.f32 1.0, %v883_v12 }
 0x88c   :  { %v933_v7 = vmul.f32 %v928_v38, %v923_v4  ;;  %v996_v4 = vperm.slane %v2112_v3, 3 }
 0x88d   :  { %v934_v17 = vmul.f32 %v930_v14, %v924_v15 }
 0x8c8   :  { %v938_v6 = vpop.permute.xlu1 %937 }
 0x8c9   :  { %v943_v9 = vmul.f32 %v938_v6, %v868_v63 }
 0x8cb   :  { %v2074_v11 = vadd.f32 %v943_v9, %v933_v7 }
 0x8cd   :  { %v948_v13 = vmul.f32 %v2074_v11, %v2074_v11 }
 0x8cf   :  { %952 = vrot.lane.b32.xlu0 %v948_v13, %s1801_s16 }
 0x8d0   :  { %v940_v16 = vpop.permute.xlu2 %939 }
 0x8d1   :  { %v944_v18 = vmul.f32 %v940_v16, %v883_v12 }
 0x8d3   :  { %v2079_v19 = vadd.f32 %v944_v18, %v934_v17 }
 0x8d5   :  { %v949_v43 = vmul.f32 %v2079_v19, %v2079_v19  ;;  %v1181_v54 = vpack.c.bf16 %v2079_v19, %v2074_v11 }
 0x8d7   :  { %954 = vrot.lane.b32.xlu1 %v949_v43, %s1801_s16 }
 0x941   :  { %v953_v20 = vpop.permute.xlu0 %952 }
 0x942   :  { %v958_v21 = vsel %vm114_vm0, %v953_v20, 0.0 }
 0x943   :  { %959 = vadd.xlane.f32.xlu2 %v958_v21 }
 0x949   :  { %v955_v22 = vpop.permute.xlu1 %954 }
 0x94a   :  { %v961_v23 = vsel %vm114_vm0, %v955_v22, 0.0 }
 0x94b   :  { %962 = vadd.xlane.f32.xlu0 %v961_v23 }
 0x95b   :  { %1337 = vrot.lane.b32.xlu2 %v1513_v57, %s1797_s28 }
 0x9b6   :  { %v960_v24 = vpop.xlane.xlu2 %959 }
 0x9b7   :  { %v964_v25 = vmax.f32 %v960_v24, 1e-12 }
 0x9b9   :  { %1618 = vrsqrt.f32 %v964_v25  ;;  %vm972_vm11 = vweird.f32 %v964_v25 }
 0x9be   :  { %v963_v26 = vpop.xlane.xlu0 %962 }
 0x9bf   :  { %v1619_v27 = vpop.eup %1618  ;;  %v965_v28 = vmax.f32 %v963_v26, 1e-12 }
 0x9c0   :  { %v967_v29 = vmul.f32 %v1619_v27, %v964_v25  ;;  %vm973_vm10 = vweird.f32 %v1619_v27 }
 0x9c1   :  { %1620 = vrsqrt.f32 %v965_v28  ;;  %vm974_vm12 = vmor %vm972_vm11, %vm973_vm10  ;;  %vm982_vm14 = vweird.f32 %v965_v28  ;;  %vm1158_vm10 = vcmask 523264  }
 0x9c2   :  { %v968_v34 = vmul.f32 %v1619_v27, %v967_v29  ;;  %1622 = vrcp.f32 %v1811_v61 }
 0x9c4   :  { %v969_v36 = vmul.f32 0.5, %v968_v34 }
 0x9c6   :  { %v970_v37 = vsub.f32 1.5, %v969_v36  ;;  %v1534_v36 = vld [vmem:[%s2203_s7 + $0x10] sm:$0xff] }
 0x9c7   :  { %v1621_v39 = vpop.eup %1620 }
 0x9c8   :  { %v977_v40 = vmul.f32 %v1621_v39, %v965_v28  ;;  %v971_v33 = vmul.f32 %v1619_v27, %v970_v37  ;;  %vm983_vm13 = vweird.f32 %v1621_v39  ;;  %v1623_v62 = vpop.eup %1622 }
 0x9c9   :  { %vm984_vm15 = vmor %vm982_vm14, %vm983_vm13  ;;  %v1032_v32 = vmul.f32 1.4142135, %v1623_v62  ;;  %vm1036_vm1 = vweird.f32 %v1623_v62 }
 0x9ca   :  { %v978_v0 = vmul.f32 %v1621_v39, %v977_v40  ;;  %v975_v42 = vsel %vm974_vm12, %v1619_v27, %v971_v33  ;;  %v1535_v27 = vld [vmem:[%s2203_s7 + $0x18] sm:$0xff] }
 0x9cb   :  { %v987_v46 = vmul.f32 %v986_v44, %v975_v42  ;;  %v1033_v63 = vsub.f32 1.0, %v1032_v32  ;;  %1166 = vmatpush.bf16.msra.mxu0 %v1535_v27  ;;  %v1533_v42 = vld [vmem:[%s2203_s7 + $0x8] sm:$0xff] }
 0x9cc   :  { %v979_v41 = vmul.f32 0.5, %v978_v0 }
 0x9cd   :  { %v989_v49 = vmul.f32 %v987_v46, %v2074_v11  ;;  %v1034_v1 = vmul.f32 %v1623_v62, %v1033_v63 }
 0x9ce   :  { %v980_v2 = vsub.f32 1.5, %v979_v41 }
 0x9cf   :  { %v1035_v38 = vadd.f32 %v1623_v62, %v1034_v1  ;;  %1167 = vmatpush.bf16.msra.mxu0 %v1534_v36 }
 0x9d0   :  { %v981_v45 = vmul.f32 %v1621_v39, %v980_v2 }
 0x9d1   :  { %v1037_v6 = vsel %vm1036_vm1, %v1623_v62, %v1035_v38 }
 0x9d2   :  { %v985_v47 = vsel %vm984_vm15, %v1621_v39, %v981_v45 }
 0x9d3   :  { %v988_v48 = vmul.f32 %v986_v44, %v985_v47  ;;  %1168 = vmatpush.bf16.msra.mxu0 %v1533_v42 }
 0x9d5   :  { %v990_v50 = vmul.f32 %v988_v48, %v2079_v19  ;;  %v1532_v48 = vld [vmem:[%s2203_s7] sm:$0xff] }
 0x9d7   :  { %v991_v51 = vpack.c.bf16 %v990_v50, %v989_v49  ;;  %1169 = vmatpush.bf16.msra.mxu0 %v1532_v48 }
 0x9d9   :  { %998 = vrot.lane.b32.xlu1 %v991_v51, %s1801_s16 }
 0x9e1   :  { %1212 = vrot.lane.b32.xlu1 %v1181_v54, %s1801_s16 }
 0x9e9   :  { %1339 = vrot.lane.b32.xlu1 %v1517_v35, %s1797_s28 }
 0x9f1   :  { %1328 = vrot.lane.b32.xlu1 %v2074_v11, %s1801_s16 }
 0x9f9   :  { %1330 = vrot.lane.b32.xlu1 %v2079_v19, %s1801_s16 }
 0xa4b   :  { %v999_v58 = vpop.permute.xlu1 %998 }
 0xa4c   :  { %1481 = vmatmul.msk.bf16.vlgmr.msra.gmra.mxu3 %vm114_vm0, %v999_v58 }
 0xa53   :  { %v1213_v59 = vpop.permute.xlu1 %1212 }
 0xa54   :  { %1518 = vmatmul.msk.bf16.vlgmr.msra.gmra.mxu2 %vm114_vm0, %v1213_v59 }
 0xa5b   :  { %v1340_v60 = vpop.permute.xlu1 %1339 }
 0xa5c   :  { %1352 = vmatpush.bf16.msrb.mxu3 %v1340_v60 }
 0xacf   :  { %v1024_v5 = vpop.f32.mrf.mxu3 }
 0xad0   :  { %v2115_v7 = vadd.f32 %v1024_v5, %v996_v4 }
 0xad2   :  { %v2118_v8 = vmul.f32 %v1037_v6, %v2115_v7 }
 0xad4   :  { %v1040_v9 = vmul.f32 %v2118_v8, %v2118_v8 }
 0xad6   :  { %v1041_v10 = vmin.f32 %v1040_v9, 16.0 }
 0xad7   :  { %v1026_v12 = vpop.f32.mrf.mxu3 }
 0xad8   :  { %v1042_v13 = vmul.f32 2.1237322e-06, %v1041_v10  ;;  %v1053_v14 = vmul.f32 3.8918573e-05, %v1041_v10  ;;  %v2122_v15 = vadd.f32 %v1026_v12, %v996_v4 }
 0xada   :  { %v1043_v16 = vadd.f32 0.00028619796, %v1042_v13  ;;  %v1054_v17 = vadd.f32 0.001143296, %v1053_v14  ;;  %v2125_v18 = vmul.f32 %v1037_v6, %v2122_v15 }
 0xadc   :  { %v1055_v43 = vmul.f32 %v1054_v17, %v1041_v10  ;;  %v1080_v20 = vmul.f32 %v2125_v18, %v2125_v18  ;;  %v1044_v21 = vmul.f32 %v1043_v16, %v1041_v10 }
 0xade   :  { %v1056_v22 = vadd.f32 0.014752088, %v1055_v43  ;;  %v1081_v23 = vmin.f32 %v1080_v20, 16.0  ;;  %v1045_v28 = vadd.f32 0.0036580483, %v1044_v21 }
 0xae0   :  { %v1057_v24 = vmul.f32 %v1056_v22, %v1041_v10  ;;  %v1082_v25 = vmul.f32 2.1237322e-06, %v1081_v23  ;;  %v1093_v26 = vmul.f32 3.8918573e-05, %v1081_v23  ;;  %v1046_v39 = vmul.f32 %v1045_v28, %v1041_v10 }
 0xae2   :  { %v1058_v29 = vadd.f32 0.112945676, %v1057_v24  ;;  %v1083_v30 = vadd.f32 0.00028619796, %v1082_v25  ;;  %v1094_v31 = vadd.f32 0.001143296, %v1093_v26 }
 0xae3   :  { %v1047_v44 = vadd.f32 0.05243302, %v1046_v39  ;;  %v1539_v39 = vld [vmem:[%s2204_s8 + $0x14] sm:$0xf0] }
 0xae4   :  { %v1059_v34 = vmul.f32 %v1058_v29, %v1041_v10  ;;  %v1084_v35 = vmul.f32 %v1083_v30, %v1081_v23  ;;  %v1095_v37 = vmul.f32 %v1094_v31, %v1081_v23  ;;  %v1029_v30 = vmul.f32 0.5, %v2115_v7  ;;  %v1503_v7 = vld [vmem:[%s2204_s8] sm:$0xf] }
 0xae5   :  { %v1048_v50 = vmul.f32 %v1047_v44, %v1041_v10  ;;  %v1030_v31 = vmul.f32 0.5, %v2122_v15  ;;  %v1537_v15 = vld [vmem:[%s2204_s8 + $0x4] sm:$0xf0] }
 0xae6   :  { %v1060_v40 = vadd.f32 0.4994258, %v1059_v34  ;;  %v1085_v33 = vadd.f32 0.0036580483, %v1084_v35  ;;  %v1096_v0 = vadd.f32 0.014752088, %v1095_v37 }
 0xae7   :  { %v1049_v55 = vadd.f32 0.18741608, %v1048_v50  ;;  %v1338_v50 = vpop.permute.xlu2 %1337 }
 0xae8   :  { %v1061_v41 = vmul.f32 %v1060_v40, %v1041_v10  ;;  %v1097_v2 = vmul.f32 %v1096_v0, %v1081_v23  ;;  %v1086_v46 = vmul.f32 %v1085_v33, %v1081_v23  ;;  %v1504_v33 = vor.u32 %v1537_v15, %v1503_v7  ;;  %1353 = vmatpush.bf16.msrb.mxu3 %v1338_v50 }
 0xae9   :  { %v1050_v60 = vmul.f32 %v1049_v55, %v1041_v10 }
 0xaea   :  { %v1062_v45 = vadd.f32 1.0, %v1061_v41  ;;  %v1098_v47 = vadd.f32 0.112945676, %v1097_v2  ;;  %v1087_v51 = vadd.f32 0.05243302, %v1086_v46  ;;  %v1133_v41 = vperm.slane %v2112_v3, 4  ;;  %v2159_v46 = vpop.f32.mrf.mxu2 }
 0xaeb   :  { %v1051_v38 = vadd.f32 1.1283791, %v1050_v60 }
 0xaec   :  { %1624 = vrcp.f32 %v1062_v45  ;;  %v1099_v49 = vmul.f32 %v1098_v47, %v1081_v23  ;;  %v1088_v57 = vmul.f32 %v1087_v51, %v1081_v23  ;;  %v1074_v62 = vand.u32 2147483648, %v1062_v45 }
 0xaed   :  { %v1072_v63 = vand.u32 2147483647, %v1062_v45  ;;  %vm1068_vm3 = vweird.f32 %v1062_v45  ;;  %v1052_v14 = vmul.f32 %v1051_v38, %v2118_v8 }
 0xaee   :  { %v1100_v52 = vadd.f32 0.4994258, %v1099_v49  ;;  %v1089_v32 = vadd.f32 0.18741608, %v1088_v57  ;;  %v1075_v6 = vor.u32 1.1754944e-38, %v1074_v62 }
 0xaef   :  { %vm1073_vm5 = vcmp.eq.f32.partialorder %v1072_v63, 8.507059e+37  ;;  %v1329_v63 = vpop.permute.xlu1 %1328 }
 0xaf0   :  { %v1101_v53 = vmul.f32 %v1100_v52, %v1081_v23  ;;  %v1090_v9 = vmul.f32 %v1089_v32, %v1081_v23 }
 0xaf2   :  { %v1625_v54 = vpop.eup %1624  ;;  %v1102_v58 = vadd.f32 1.0, %v1101_v53  ;;  %v1091_v10 = vadd.f32 1.1283791, %v1090_v9  ;;  %v2165_v51 = vpop.f32.mrf.mxu2 }
 0xaf3   :  { %v1064_v56 = vmul.f32 %v1625_v54, %v1062_v45  ;;  %vm1069_vm2 = vweird.f32 %v1625_v54 }
 0xaf4   :  { %1626 = vrcp.f32 %v1102_v58  ;;  %vm1070_vm4 = vmor %vm1068_vm3, %vm1069_vm2  ;;  %v1114_v17 = vand.u32 2147483648, %v1102_v58  ;;  %v1112_v21 = vand.u32 2147483647, %v1102_v58  ;;  %vm1108_vm7 = vweird.f32 %v1102_v58 }
 0xaf5   :  { %v1065_v59 = vsub.f32 1.0, %v1064_v56  ;;  %v1092_v26 = vmul.f32 %v1091_v10, %v2125_v18  ;;  %v1507_v18 = vld [vmem:[%s2204_s8 + $0x10] sm:$0xf]  ;;  %s1812_s8 = smov [#allocation12]  }
 0xaf6   :  { %v1115_v24 = vor.u32 1.1754944e-38, %v1114_v17  ;;  %vm1113_vm9 = vcmp.eq.f32.partialorder %v1112_v21, 8.507059e+37  ;;  %v1508_v40 = vor.u32 %v1539_v39, %v1507_v18 }
 0xaf7   :  { %v1066_v61 = vmul.f32 %v1625_v54, %v1065_v59  ;;  %v1331_v21 = vpop.permute.xlu1 %1330 }
 0xaf8   :  { %1203 = vmatpush.bf16.msra.mxu1 %v1508_v40 }
 0xaf9   :  { %v1067_v1 = vadd.f32 %v1625_v54, %v1066_v61 }
 0xafa   :  { %v1627_v4 = vpop.eup %1626 }
 0xafb   :  { %v1071_v5 = vsel %vm1070_vm4, %v1625_v54, %v1067_v1  ;;  %v1104_v12 = vmul.f32 %v1627_v4, %v1102_v58  ;;  %vm1109_vm6 = vweird.f32 %v1627_v4 }
 0xafc   :  { %v1076_v13 = vsel %vm1073_vm5, %v1075_v6, %v1071_v5  ;;  %vm1110_vm8 = vmor %vm1108_vm7, %vm1109_vm6  ;;  %1204 = vmatpush.bf16.msra.mxu1 %v1504_v33 }
 0xafd   :  { %v1105_v16 = vsub.f32 1.0, %v1104_v12  ;;  %v1077_v43 = vmul.f32 %v1076_v13, %v1052_v14 }
 0xaff   :  { %v1106_v20 = vmul.f32 %v1627_v4, %v1105_v16  ;;  %v1482_v25 = vclamps-f32 %v1077_v43, 1.0 }
 0xb01   :  { %v1107_v22 = vadd.f32 %v1627_v4, %v1106_v20  ;;  %v1120_v29 = vadd.f32 1.0, %v1482_v25 }
 0xb03   :  { %v1111_v23 = vsel %vm1110_vm8, %v1627_v4, %v1107_v22  ;;  %v1122_v35 = vmul.f32 %v1120_v29, %v1029_v30 }
 0xb04   :  { %v1116_v27 = vsel %vm1113_vm9, %v1115_v24, %v1111_v23 }
 0xb05   :  { %v1117_v28 = vmul.f32 %v1116_v27, %v1092_v26 }
 0xb07   :  { %v1483_v8 = vclamps-f32 %v1117_v28, 1.0  ;;  %v1279_v28 = vperm.slane %v2112_v3, 5 }
 0xb09   :  { %v1121_v34 = vadd.f32 1.0, %v1483_v8 }
 0xb0b   :  { %v1123_v36 = vmul.f32 %v1121_v34, %v1030_v31 }
 0xb0d   :  { %v1124_v37 = vpack.c.bf16 %v1123_v36, %v1122_v35 }
 0xb0f   :  { %1500 = vmatmul.msk.bf16.vlgmr.msra.gmra.mxu0 %vm1158_vm10, %v1124_v37 }
 0xb8c   :  { %v1171_v0 = vpop.f32.mrf.mxu0 }
 0xb8d   :  { %v1172_v2 = vadd.f32 %v1171_v0, %v1133_v41 }
 0xb94   :  { %v1173_v42 = vpop.f32.mrf.mxu0 }
 0xb95   :  { %v1174_v44 = vadd.f32 %v1173_v42, %v1133_v41 }
 0xb97   :  { %v1180_v45 = vpack.c.bf16 %v1174_v44, %v1172_v2 }
 0xb99   :  { %1509 = vmatmul.msk.bf16.vlgmr.msra.gmra.mxu1 %vm114_vm0, %v1180_v45 }
 0xc16   :  { %v2161_v47 = vpop.f32.mrf.mxu1 }
 0xc17   :  { %v1239_v48 = vadd.f32 %v2159_v46, %v2161_v47 }
 0xc19   :  { %v1519_v49 = vmul.f32 -1.442695, %v1239_v48 }
 0xc1b   :  { %1628 = vpow2.f32 %v1519_v49 }
 0xc1e   :  { %v2167_v52 = vpop.f32.mrf.mxu1 }
 0xc1f   :  { %v1240_v53 = vadd.f32 %v2165_v51, %v2167_v52 }
 0xc21   :  { %v1629_v54 = vpop.eup %1628  ;;  %v1520_v55 = vmul.f32 -1.442695, %v1240_v53 }
 0xc22   :  { %v1247_v56 = vadd.f32 1.0, %v1629_v54 }
 0xc23   :  { %1630 = vpow2.f32 %v1520_v55 }
 0xc24   :  { %1632 = vrcp.f32 %v1247_v56  ;;  %v1260_v4 = vand.u32 2147483648, %v1247_v56  ;;  %vm1254_vm12 = vweird.f32 %v1247_v56  ;;  %v1258_v6 = vand.u32 2147483647, %v1247_v56 }
 0xc26   :  { %v1261_v16 = vor.u32 1.1754944e-38, %v1260_v4  ;;  %vm1259_vm1 = vcmp.eq.f32.partialorder %v1258_v6, 8.507059e+37 }
 0xc29   :  { %v1631_v57 = vpop.eup %1630 }
 0xc2a   :  { %v1633_v58 = vpop.eup %1632  ;;  %v1248_v59 = vadd.f32 1.0, %v1631_v57 }
 0xc2b   :  { %v1250_v60 = vmul.f32 %v1633_v58, %v1247_v56  ;;  %vm1255_vm11 = vweird.f32 %v1633_v58 }
 0xc2c   :  { %1634 = vrcp.f32 %v1248_v59  ;;  %v1275_v9 = vand.u32 2147483648, %v1248_v59  ;;  %vm1256_vm13 = vmor %vm1254_vm12, %vm1255_vm11  ;;  %v1273_v13 = vand.u32 2147483647, %v1248_v59  ;;  %vm1269_vm15 = vweird.f32 %v1248_v59 }
 0xc2d   :  { %v1251_v61 = vsub.f32 1.0, %v1250_v60 }
 0xc2e   :  { %v1276_v17 = vor.u32 1.1754944e-38, %v1275_v9  ;;  %vm1274_vm3 = vcmp.eq.f32.partialorder %v1273_v13, 8.507059e+37 }
 0xc2f   :  { %v1252_v62 = vmul.f32 %v1633_v58, %v1251_v61 }
 0xc31   :  { %v1253_v38 = vadd.f32 %v1633_v58, %v1252_v62 }
 0xc32   :  { %v1635_v32 = vpop.eup %1634 }
 0xc33   :  { %v1265_v1 = vmul.f32 %v1635_v32, %v1248_v59  ;;  %vm1270_vm14 = vweird.f32 %v1635_v32  ;;  %v1257_v14 = vsel %vm1256_vm13, %v1633_v58, %v1253_v38 }
 0xc34   :  { %vm1271_vm2 = vmor %vm1269_vm15, %vm1270_vm14  ;;  %v1262_v43 = vsel %vm1259_vm1, %v1261_v16, %v1257_v14 }
 0xc35   :  { %v1266_v5 = vsub.f32 1.0, %v1265_v1  ;;  %v1334_v24 = vmul.f32 %v1329_v63, %v1262_v43 }
 0xc37   :  { %v1267_v12 = vmul.f32 %v1635_v32, %v1266_v5 }
 0xc39   :  { %v1268_v10 = vadd.f32 %v1635_v32, %v1267_v12 }
 0xc3b   :  { %v1272_v20 = vsel %vm1271_vm2, %v1635_v32, %v1268_v10 }
 0xc3c   :  { %v1277_v22 = vsel %vm1274_vm3, %v1276_v17, %v1272_v20 }
 0xc3d   :  { %v1335_v25 = vmul.f32 %v1331_v21, %v1277_v22 }
 0xc3f   :  { %v1336_v26 = vpack.c.bf16 %v1335_v25, %v1334_v24 }
 0xc41   :  { %1523 = vmatmul.msk.bf16.vlgmr.msrb.gmra.mxu3 %vm114_vm0, %v1336_v26 }
 0xcc4   :  { %v1355_v23 = vpop.f32.mrf.mxu3 }
 0xcc5   :  { %1362 = vrot.lane.b32.xlu0 %v1355_v23, %s1797_s28 }
 0xccc   :  { %v1357_v27 = vpop.f32.mrf.mxu3 }
 0xccd   :  { %1364 = vrot.lane.b32.xlu1 %v1357_v27, %s1797_s28  ;;  %s1402_s28 = sshll.u32 %s1812_s8, 4  ;;  %s1403_s28 = int_to_ptr.vmem [resolvable:$true] %s1402_s28 }
 0xcd5   :  { %1281 = vrot.lane.b32.xlu1 %v1279_v28, %s1810_s18 }
 0xd37   :  { %v1363_v29 = vpop.permute.xlu0 %1362 }
 0xd38   :  { %v1368_v8 = vadd.f32 %v1363_v29, %v2161_v47 }
 0xd3a   :  { %1636 = vtanh.f32 %v1368_v8 }
 0xd3f   :  { %v1365_v30 = vpop.permute.xlu1 %1364 }
 0xd40   :  { %v1637_v31 = vpop.eup %1636  ;;  %v1369_v34 = vadd.f32 %v1365_v30, %v2167_v52 }
 0xd41   :  { %1378 = vrot.lane.b32.xlu1 %v1637_v31, %s1801_s16 }
 0xd42   :  { %1638 = vtanh.f32 %v1369_v34 }
 0xd47   :  { %v1282_v36 = vpop.permute.xlu1 %1281 }
 0xd48   :  { %v1639_v35 = vpop.eup %1638  ;;  %v1284_v37 = vadd.f32 %v1282_v36, %v2161_v47  ;;  %v1285_v18 = vadd.f32 %v1282_v36, %v2167_v52 }
 0xd49   :  { %1380 = vrot.lane.b32.xlu0 %v1639_v35, %s1801_s16 }
 0xd4a   :  { %v1286_v3 = vadd.f32 %v1284_v37, %v2159_v46  ;;  %v1287_v40 = vadd.f32 %v1285_v18, %v2165_v51 }
 0xd4c   :  { %v1521_v39 = vmul.f32 -1.442695, %v1286_v3  ;;  %v1522_v7 = vmul.f32 -1.442695, %v1287_v40 }
 0xd4e   :  { %1640 = vpow2.f32 %v1521_v39 }
 0xd4f   :  { %1642 = vpow2.f32 %v1522_v7 }
 0xd54   :  { %v1641_v15 = vpop.eup %1640 }
 0xd55   :  { %v1294_v33 = vadd.f32 1.0, %v1641_v15  ;;  %v1643_v0 = vpop.eup %1642 }
 0xd56   :  { %v1295_v41 = vadd.f32 1.0, %v1643_v0 }
 0xd57   :  { %1644 = vrcp.f32 %v1294_v33  ;;  %v1307_v50 = vand.u32 2147483648, %v1294_v33  ;;  %vm1301_vm5 = vweird.f32 %v1294_v33  ;;  %v1305_v51 = vand.u32 2147483647, %v1294_v33 }
 0xd58   :  { %1646 = vrcp.f32 %v1295_v41  ;;  %v1322_v57 = vand.u32 2147483648, %v1295_v41  ;;  %vm1316_vm9 = vweird.f32 %v1295_v41  ;;  %v1320_v59 = vand.u32 2147483647, %v1295_v41 }
 0xd59   :  { %v1308_v54 = vor.u32 1.1754944e-38, %v1307_v50  ;;  %vm1306_vm7 = vcmp.eq.f32.partialorder %v1305_v51, 8.507059e+37 }
 0xd5a   :  { %v1323_v62 = vor.u32 1.1754944e-38, %v1322_v57  ;;  %vm1321_vm11 = vcmp.eq.f32.partialorder %v1320_v59, 8.507059e+37 }
 0xd5d   :  { %v1645_v42 = vpop.eup %1644 }
 0xd5e   :  { %v1297_v2 = vmul.f32 %v1645_v42, %v1294_v33  ;;  %v1647_v45 = vpop.eup %1646  ;;  %vm1302_vm4 = vweird.f32 %v1645_v42 }
 0xd5f   :  { %v1312_v46 = vmul.f32 %v1647_v45, %v1295_v41  ;;  %vm1303_vm6 = vmor %vm1301_vm5, %vm1302_vm4  ;;  %vm1317_vm8 = vweird.f32 %v1647_v45 }
 0xd60   :  { %v1298_v44 = vsub.f32 1.0, %v1297_v2  ;;  %vm1318_vm10 = vmor %vm1316_vm9, %vm1317_vm8 }
 0xd61   :  { %v1313_v49 = vsub.f32 1.0, %v1312_v46 }
 0xd62   :  { %v1299_v47 = vmul.f32 %v1645_v42, %v1298_v44 }
 0xd63   :  { %v1314_v53 = vmul.f32 %v1647_v45, %v1313_v49 }
 0xd64   :  { %v1300_v48 = vadd.f32 %v1645_v42, %v1299_v47 }
 0xd65   :  { %v1315_v56 = vadd.f32 %v1647_v45, %v1314_v53 }
 0xd66   :  { %v1304_v52 = vsel %vm1303_vm6, %v1645_v42, %v1300_v48 }
 0xd67   :  { %v1309_v55 = vsel %vm1306_vm7, %v1308_v54, %v1304_v52  ;;  %v1319_v60 = vsel %vm1318_vm10, %v1647_v45, %v1315_v56 }
 0xd68   :  { %v1372_v58 = vsub.f32 1.0, %v1309_v55  ;;  %v1324_v1 = vsel %vm1321_vm11, %v1323_v62, %v1319_v60 }
 0xd69   :  { %v1373_v4 = vsub.f32 1.0, %v1324_v1 }
 0xd6a   :  { %v1374_v32 = vmul.f32 %v1372_v58, %v2074_v11 }
 0xd6b   :  { %v1375_v6 = vmul.f32 %v1373_v4, %v2079_v19 }
 0xdb3   :  { %v1379_v61 = vpop.permute.xlu1 %1378 }
 0xdb4   :  { %v1384_v63 = vmul.f32 %v1379_v61, %v1309_v55 }
 0xdb6   :  { %v1386_v38 = vadd.f32 %v1384_v63, %v1374_v32 }
 0xdb8   :  { %1390 = vrot.lane.b32.xlu2 %v1386_v38, %s1801_s16 }
 0xdbb   :  { %v1381_v5 = vpop.permute.xlu0 %1380 }
 0xdbc   :  { %v1385_v9 = vmul.f32 %v1381_v5, %v1324_v1 }
 0xdbe   :  { %v1387_v12 = vadd.f32 %v1385_v9, %v1375_v6 }
 0xdc0   :  { %1392 = vrot.lane.b32.xlu1 %v1387_v12, %s1801_s16 }
 0xe12   :  { %v1391_v13 = vpop.permute.xlu2 %1390 }
 0xe13   :  { %1396 = vst.msk [vmem:[#allocation12] sm:$0xff] %vm114_vm0, %v1391_v13 }
 0xe32   :  { %v1393_v11 = vpop.permute.xlu1 %1392 }
 0xe33   :  { %1397 = vst.msk [vmem:[#allocation12 + $0x8] sm:$0xff] %vm114_vm0, %v1393_v11 }
 0xe34   :  { %1410 = dma.vmem_to_hbm [thread:$0]  %s1403_s28, 256, %s1405_s21, [#allocation4], %s1793_s19, %s1793_s19, %s1794_s20  }
 0xe35   :  { %1789 = dma.done.wait [#allocation4], 256  }
 0xe36   :  { %1790 = vsyncadd [#allocation4], 4294967040 }
 0xe37   :  { %1415 = vsyncpa [#allocation3], 1 }
 0xe38   :  { %1416 = vsyncpa [#allocation8], 1 }
 0xe39   :  { %1417 = vsyncpa [#allocation11], 1 }
 0xe3a   :  { %1418 = vsyncpa [#allocation4], 1 }
 0xe3b   :  { %1419 = vsyncpa [#allocation5], 1 }

</bundles_post_ra>
